<compile_context>
chip_gen: v7x
topology: tpu7x:2x2x1
jax: 0.10.0
libtpu: 0.0.40
codegen_flags: <defaults>
</compile_context>

<pallas_src>
import math

import numpy as np
import jax
import jax.numpy as jnp
from jax.experimental import pallas as pl
from jax.experimental.pallas import tpu as pltpu


# ---------------------------------------------------------------------------
# Model configuration (mirrors MSNet.__init__)
# ---------------------------------------------------------------------------
NUM_LAYERS = 4
NUM_HIDDEN = 16          # num_hidden_channels
NUM_OUT = 1              # num_output_channels
R = math.sqrt(3.0)       # coordinate range +/- sqrt(3)

CHUNK = 512              # lanes per inner chunk (multiple of 128)
_HALF_PI = math.pi / 2.0


# ---------------------------------------------------------------------------
# atan polynomial: fit once at import time (deterministic, near-minimax).
# Degree 6 in z = x^2 on z in [0,1]  ->  |atan error| ~ 1e-6 on [-1, 1].
# ---------------------------------------------------------------------------
def _fit_atan_poly(deg=6, npts=2048):
    k = np.arange(npts)
    z = 0.5 - 0.5 * np.cos((2 * k + 1) * np.pi / (2 * npts))   # Chebyshev nodes on (0,1)
    x = np.sqrt(z)
    f = np.arctan(x) / x                                        # smooth, -> 1 as x -> 0
    c = np.polynomial.polynomial.polyfit(z, f, deg)
    return tuple(float(v) for v in c)                           # c0 + c1 z + ... + c_deg z^deg


_ATAN_COEFFS = _fit_atan_poly()


def _fast_atan(x):
    """atan(x): polynomial on |x|<=1, pi/2 - atan(1/|x|) for |x|>1.

    The reciprocal runs on the EUP (pl.reciprocal approx) + one Newton step,
    keeping the VALU slot (the kernel's binding unit) light."""
    ax = jnp.abs(x)
    big = ax > 1.0
    safe = jnp.maximum(ax, 1.0)                 # avoid 1/0 in the unused branch
    r = pl.reciprocal(safe, approx=True)        # EUP slot
    r = r * (2.0 - safe * r)                    # one Newton refinement (VALU, cheap)
    z = jnp.where(big, r, ax)                   # z in [0, 1]
    z2 = z * z
    p = _ATAN_COEFFS[-1]
    for c in reversed(_ATAN_COEFFS[:-1]):
        p = p * z2 + c
    a = p * z                                   # atan(z)
    a = jnp.where(big, _HALF_PI - a, a)
    return jnp.where(x < 0.0, -a, a)


# ---------------------------------------------------------------------------
# Small helpers
# ---------------------------------------------------------------------------
def _cdiv(a, b):
    return -(-a // b)


def _div_mod(g, d):
    """Vector floor-div / mod of a non-negative int32 array by a positive
    Python-int constant.  Pow2 -> shift/mask; otherwise a float-reciprocal
    multiply with correction (avoids the long vector int32 divide)."""
    if d & (d - 1) == 0:
        shift = d.bit_length() - 1
        return jnp.right_shift(g, shift), jnp.bitwise_and(g, d - 1)
    # Exact for g < 2**23, which covers image-sized flat indices here.
    q = jnp.floor(g.astype(jnp.float32) * np.float32(1.0 / d)).astype(jnp.int32)
    r = g - q * d
    hi = (r >= d).astype(jnp.int32)
    q, r = q + hi, r - hi * d
    lo = (r < 0).astype(jnp.int32)
    return q - lo, r + lo * d


def _tensorcores_per_device():
    """Heuristic TensorCores-per-device (affects only tiling, not results)."""
    try:
        kind = jax.devices()[0].device_kind.lower()
    except Exception:
        return 1
    return 2 if any(s in kind for s in ("v7", "7x", "v4")) else 1


def _choose_grid(n, cores, tile_lanes):
    """Pick (grid_steps, rows_per_tile). Rows are CHUNK-lane output chunks."""
    rows_total = max(1, _cdiv(n, CHUNK))
    max_rows = max(1, tile_lanes // CHUNK)
    steps = _cdiv(rows_total, max_rows)
    if cores > 1:                                   # even split across TensorCores
        steps = max(cores, _cdiv(steps, cores) * cores)
    if steps == 1:
        rows_per_tile = rows_total                  # block == full dim (no 8-row rule)
    else:
        rows_per_tile = _cdiv(_cdiv(rows_total, steps), 8) * 8   # (8,128) block rule
        steps = _cdiv(rows_total, rows_per_tile)
        if cores > 1:
            steps = max(cores, _cdiv(steps, cores) * cores)
    return steps, rows_per_tile


# ---------------------------------------------------------------------------
# Pallas kernel: whole 4-layer network, one 512-lane chunk at a time.
# Operands:
#   w0_ref : (16, 2)   f32   first conv weight
#   wh_ref : (2,16,32) bf16  hidden convs, [Wa | Wb] merged, scalings folded
#   wf_ref : (8, 32)   bf16  output conv (row 0 real, rows 1..7 zero padding)
#   bp_ref : (4, 16, 1) f32  per-layer biases (layer-3 bias in row 0)
#   o_ref  : (rows_per_tile, CHUNK) f32   sigmoid output, row-major flat order
# ---------------------------------------------------------------------------
def make_msnet_kernel(size, rows_per_tile, matmul_dtype):
    W = size
    H = size
    step = (2.0 * R / (size - 1)) if size > 1 else 0.0   # linspace(-R, R, size) spacing

    def kernel(w0_ref, wh_ref, wf_ref, bp_ref, o_ref):
        lane = jax.lax.broadcasted_iota(jnp.int32, (1, CHUNK), 1)
        tile_base = pl.program_id(0) * (rows_per_tile * CHUNK)

        @pl.loop(0, rows_per_tile)
        def _(r):
            # ---- in-kernel coordinates for this chunk (flat = b*H*W + h*W + w)
            g = tile_base + r * CHUNK + lane
            s, w_idx = _div_mod(g, W)
            _, h_idx = _div_mod(s, H)
            xc = h_idx.astype(jnp.float32) * step - R     # channel 0: varies along rows
            yc = w_idx.astype(jnp.float32) * step - R     # channel 1: varies along cols
            inp = jnp.concatenate([xc, yc], axis=0)       # (2, CHUNK)

            # ---- conv0 (f32 matmul; K=2 is tiny, keeps coords exact)
            h = jnp.dot(w0_ref[...], inp,
                        preferred_element_type=jnp.float32) + bp_ref[0]   # (16, C)

            # ---- conv1 / conv2: merged K=32 matmul on bf16 operands
            #   h_next = [Wa/0.67 | Wb/0.6] @ [atan(h); atan(h)^2] + b
            for l in range(NUM_LAYERS - 2):
                t = _fast_atan(h)                                          # f32 elementwise
                stack = jnp.concatenate([t, t * t], axis=0).astype(matmul_dtype)
                h = jnp.dot(wh_ref[l], stack,
                            preferred_element_type=jnp.float32) + bp_ref[l + 1]

            # ---- conv3: only row 0 is real output (weight padded to 8 rows);
            #      slice before bias/sigmoid so no N-wide work on padding rows.
            t = _fast_atan(h)
            stack = jnp.concatenate([t, t * t], axis=0).astype(matmul_dtype)
            out = jnp.dot(wf_ref[...], stack, preferred_element_type=jnp.float32)
            out = out[0:NUM_OUT, :] + bp_ref[NUM_LAYERS - 1][0:NUM_OUT, :]
            o_ref[pl.ds(r, 1), :] = jax.nn.sigmoid(out).astype(o_ref.dtype)

    return kernel


# ---------------------------------------------------------------------------
# Parameter init (mirrors weights_init + zeroing of the last conv weight)
# ---------------------------------------------------------------------------
def init_params(key):
    params = []
    for i in range(NUM_LAYERS):
        out_c = NUM_OUT if i == NUM_LAYERS - 1 else NUM_HIDDEN
        in_c = 2 if i == 0 else NUM_HIDDEN * 2
        key, sub = jax.random.split(key)
        w = jax.random.normal(sub, (out_c, in_c), jnp.float32) * math.sqrt(1.0 / in_c)
        if i == NUM_LAYERS - 1:
            w = jnp.zeros_like(w)                      # zeros_ on last conv weight
        b = jnp.zeros((out_c,), jnp.float32)           # biases zero-initialized
        params.append((w, b))
    return params


def pack_params(params, matmul_dtype=jnp.bfloat16):
    """Merge each layer's weight halves with the composite-activation scalings
    folded in, pad the output layer to 8 rows, pack biases separately."""
    (w0, b0), (w1, b1), (w2, b2), (w3, b3) = params

    def fold(w):
        return jnp.concatenate([w[:, :NUM_HIDDEN] * (1.0 / 0.67),   # acts on atan(x)
                                w[:, NUM_HIDDEN:] * (1.0 / 0.6)],   # acts on atan(x)^2
                               axis=1)

    wh = jnp.stack([fold(w1), fold(w2)], axis=0).astype(matmul_dtype)      # (2,16,32)
    wf = jnp.pad(fold(w3), ((0, 8 - NUM_OUT), (0, 0))).astype(matmul_dtype)  # (8,32)

    bp = jnp.zeros((NUM_LAYERS, NUM_HIDDEN, 1), jnp.float32)
    for l, b in enumerate((b0, b1, b2, b3)):
        bp = bp.at[l, :b.shape[0], 0].set(b)                                # (4,16,1)

    return w0.astype(jnp.float32), wh, wf, bp


# ---------------------------------------------------------------------------
# Forward pass (wrapper): only the 1-channel output ever touches HBM.
# ---------------------------------------------------------------------------
def msnet_forward(params, batch, size, *, tile_lanes=32768,
                  matmul_dtype=jnp.bfloat16):
    w0, wh, wf, bp = pack_params(params, matmul_dtype)

    n = batch * size * size
    cores = _tensorcores_per_device()
    steps, rows_per_tile = _choose_grid(n, cores, tile_lanes)
    rows_padded = steps * rows_per_tile

    kernel = make_msnet_kernel(size, rows_per_tile, matmul_dtype)
    out = pl.pallas_call(
        kernel,
        out_shape=jax.ShapeDtypeStruct((rows_padded, CHUNK), jnp.float32),
        grid_spec=pltpu.PrefetchScalarGridSpec(
            num_scalar_prefetch=0,
            grid=(steps,),
            in_specs=[
                pl.BlockSpec(w0.shape, lambda i: (0, 0)),        # (16, 2)
                pl.BlockSpec(wh.shape, lambda i: (0, 0, 0)),     # (2, 16, 32)
                pl.BlockSpec(wf.shape, lambda i: (0, 0)),        # (8, 32)
                pl.BlockSpec(bp.shape, lambda i: (0, 0, 0)),     # (4, 16, 1)
            ],
            out_specs=pl.BlockSpec((rows_per_tile, CHUNK), lambda i: (i, 0)),
        ),
        compiler_params=pltpu.CompilerParams(
            dimension_semantics=("parallel",),          # shard grid across TCs (v7x/v4)
            vmem_limit_bytes=32 * 1024 * 1024,          # lift v5e's 16 MiB default
        ),
    )(w0, wh, wf, bp)

    # (rows_padded, CHUNK) row-major == flat order b*H*W + h*W + w
    flat = out.reshape(-1)[:n]
    return flat.reshape(batch, size, size)[:, None, :, :]


# ---------------------------------------------------------------------------
# Pure-JAX reference (faithful to the PyTorch module) for correctness checks
# ---------------------------------------------------------------------------
def msnet_reference(params, batch, size):
    coord = jnp.linspace(-R, R, size, dtype=jnp.float32)
    xg = jnp.broadcast_to(coord[:, None], (size, size))      # varies along rows
    yg = jnp.broadcast_to(coord[None, :], (size, size))      # varies along cols
    act = jnp.broadcast_to(jnp.stack([xg, yg], axis=0)[None],
                           (batch, 2, size, size))

    def conv1x1(w, b, x):
        y = jnp.einsum('oi,bihw->bohw', w, x,
                       precision=jax.lax.Precision.HIGHEST)
        return y + b[None, :, None, None]

    (w0, b0) = params[0]
    h = conv1x1(w0, b0, act)
    for (w, b) in params[1:]:
        a = jnp.arctan(h)
        a = jnp.concatenate([a / 0.67, a * a / 0.6], axis=1)
        h = conv1x1(w, b, a)
    return jax.nn.sigmoid(h)


# ---------------------------------------------------------------------------
if __name__ == "__main__":
    batch, size = 2, 16

    # `seg` only supplies the batch size in the original module's forward.
    seg = jax.random.normal(jax.random.PRNGKey(0), (batch, 1, size, size),
                            jnp.float32)

    # 1) Init semantics: last conv weight & bias are zero -> sigmoid(0) = 0.5.
    params0 = init_params(jax.random.PRNGKey(0))
    out0 = jax.block_until_ready(msnet_forward(params0, seg.shape[0], size))
    assert out0.shape == (batch, 1, size, size)
    assert bool(jnp.allclose(out0, 0.5, atol=1e-6))

    # 2) Full-network check (non-zero weights AND biases) vs pure-JAX reference.
    key = jax.random.PRNGKey(0)
    rparams = []
    for i in range(NUM_LAYERS):
        out_c = NUM_OUT if i == NUM_LAYERS - 1 else NUM_HIDDEN
        in_c = 2 if i == 0 else NUM_HIDDEN * 2
        key, kw, kb = jax.random.split(key, 3)
        w = jax.random.normal(kw, (out_c, in_c), jnp.float32) * math.sqrt(1.0 / in_c)
        b = jax.random.normal(kb, (out_c,), jnp.float32) * 0.1
        rparams.append((w, b))
    want = msnet_reference(rparams, batch, size)

    # 2a) f32-operand path: tight check (layout, folding, fast-atan accuracy).
    got32 = jax.block_until_ready(
        msnet_forward(rparams, batch, size, matmul_dtype=jnp.float32))
    assert got32.shape == want.shape
    err32 = float(jnp.max(jnp.abs(got32 - want)))
    assert err32 < 5e-4, err32

    # 2b) default bf16-operand path: loose check (bf16 MXU operand rounding).
    got16 = jax.block_until_ready(msnet_forward(rparams, batch, size))
    err16 = float(jnp.max(jnp.abs(got16 - want)))
    assert err16 < 1e-2, err16

    print("KERNEL_OK")
</pallas_src>

<mosaic_0001>
module attributes {stable_mosaic.version = 11 : i64} {
  func.func @kernel(%arg0: i32, %arg1: memref<16x2xf32, #tpu.memory_space<vmem>>, %arg2: memref<2x16x32xbf16, #tpu.memory_space<vmem>>, %arg3: memref<8x32xbf16, #tpu.memory_space<vmem>>, %arg4: memref<4x16x1xf32, #tpu.memory_space<vmem>>, %arg5: memref<1x512xf32, #tpu.memory_space<vmem>>) attributes {dimension_semantics = [#tpu.dimension_semantics<parallel>], iteration_bounds = array<i64: 1>, scalar_prefetch = 0 : i64, scratch_operands = 0 : i64, tpu.core_type = #tpu.core_type<tc>, window_params = [{pipeline_mode = #tpu.pipeline_mode<synchronous>, transform_indices = @transform_0, window_bounds = array<i64: 16, 2>}, {pipeline_mode = #tpu.pipeline_mode<synchronous>, transform_indices = @transform_1, window_bounds = array<i64: 2, 16, 32>}, {pipeline_mode = #tpu.pipeline_mode<synchronous>, transform_indices = @transform_2, window_bounds = array<i64: 8, 32>}, {pipeline_mode = #tpu.pipeline_mode<synchronous>, transform_indices = @transform_3, window_bounds = array<i64: 4, 16, 1>}, {transform_indices = @transform_4, window_bounds = array<i64: 1, 512>}]} {
    %0 = tpu.iota {dimensions = array<i32: 1>} : vector<1x512xi32>
    %c512_i32 = arith.constant 512 : i32
    %1 = arith.muli %arg0, %c512_i32 : i32
    %c0_i32 = arith.constant 0 : i32
    %c1_i32 = arith.constant 1 : i32
    %2 = arith.muli %c0_i32, %c1_i32 : i32
    %c0_i32_0 = arith.constant 0 : i32
    %3 = arith.addi %c0_i32_0, %2 : i32
    %c512_i32_1 = arith.constant 512 : i32
    %4 = arith.muli %3, %c512_i32_1 : i32
    %5 = arith.addi %1, %4 : i32
    %6 = vector.broadcast %5 : i32 to vector<1x512xi32>
    %7 = arith.addi %6, %0 : vector<1x512xi32>
    %c4_i32 = arith.constant 4 : i32
    %8 = vector.broadcast %c4_i32 : i32 to vector<1x512xi32>
    %9 = arith.shrsi %7, %8 : vector<1x512xi32>
    %c15_i32 = arith.constant 15 : i32
    %10 = vector.broadcast %c15_i32 : i32 to vector<1x512xi32>
    %11 = arith.andi %7, %10 : vector<1x512xi32>
    %c15_i32_2 = arith.constant 15 : i32
    %12 = vector.broadcast %c15_i32_2 : i32 to vector<1x512xi32>
    %13 = arith.andi %9, %12 : vector<1x512xi32>
    %14 = arith.sitofp %13 : vector<1x512xi32> to vector<1x512xf32>
    %cst = arith.constant 0.230940104 : f32
    %15 = vector.broadcast %cst : f32 to vector<1x512xf32>
    %16 = arith.mulf %14, %15 : vector<1x512xf32>
    %cst_3 = arith.constant 1.73205078 : f32
    %17 = vector.broadcast %cst_3 : f32 to vector<1x512xf32>
    %18 = arith.subf %16, %17 : vector<1x512xf32>
    %19 = arith.sitofp %11 : vector<1x512xi32> to vector<1x512xf32>
    %cst_4 = arith.constant 0.230940104 : f32
    %20 = vector.broadcast %cst_4 : f32 to vector<1x512xf32>
    %21 = arith.mulf %19, %20 : vector<1x512xf32>
    %cst_5 = arith.constant 1.73205078 : f32
    %22 = vector.broadcast %cst_5 : f32 to vector<1x512xf32>
    %23 = arith.subf %21, %22 : vector<1x512xf32>
    %24 = tpu.concatenate %18, %23 in 0 : vector<1x512xf32>, vector<1x512xf32> -> vector<2x512xf32>
    %c0 = arith.constant 0 : index
    %c0_6 = arith.constant 0 : index
    %25 = vector.load %arg1[%c0, %c0_6] : memref<16x2xf32, #tpu.memory_space<vmem>>, vector<16x2xf32>
    %cst_7 = arith.constant dense<0.000000e+00> : vector<16x512xf32>
    %26 = tpu.matmul %25, %24, %cst_7 {dimension_numbers = #tpu.dot_dimension_numbers<[1], [0], [0], [1], [0, 0, 1, 1], [], []>} : vector<16x2xf32>, vector<2x512xf32>, vector<16x512xf32> -> vector<16x512xf32>
    %c0_8 = arith.constant 0 : index
    %c0_9 = arith.constant 0 : index
    %c0_10 = arith.constant 0 : index
    %27 = vector.load %arg4[%c0_8, %c0_9, %c0_10] : memref<4x16x1xf32, #tpu.memory_space<vmem>>, vector<1x16x1xf32>
    %28 = vector.shape_cast %27 : vector<1x16x1xf32> to vector<16x1xf32>
    %29 = vector.broadcast %28 : vector<16x1xf32> to vector<16x512xf32>
    %30 = arith.addf %26, %29 : vector<16x512xf32>
    %31 = math.absf %30 : vector<16x512xf32>
    %cst_11 = arith.constant 1.000000e+00 : f32
    %32 = vector.broadcast %cst_11 : f32 to vector<16x512xf32>
    %33 = arith.cmpf ogt, %31, %32 : vector<16x512xf32>
    %cst_12 = arith.constant 1.000000e+00 : f32
    %34 = vector.broadcast %cst_12 : f32 to vector<16x512xf32>
    %35 = arith.maximumf %31, %34 : vector<16x512xf32>
    %36 = tpu.reciprocal %35 {approx = true} : vector<16x512xf32> -> vector<16x512xf32>
    %37 = arith.mulf %35, %36 : vector<16x512xf32>
    %cst_13 = arith.constant 2.000000e+00 : f32
    %38 = vector.broadcast %cst_13 : f32 to vector<16x512xf32>
    %39 = arith.subf %38, %37 : vector<16x512xf32>
    %40 = arith.mulf %36, %39 : vector<16x512xf32>
    %41 = arith.select %33, %40, %31 : vector<16x512xi1>, vector<16x512xf32>
    %42 = arith.mulf %41, %41 : vector<16x512xf32>
    %cst_14 = arith.constant 0.00782548263 : f32
    %43 = vector.broadcast %cst_14 : f32 to vector<16x512xf32>
    %44 = arith.mulf %43, %42 : vector<16x512xf32>
    %cst_15 = arith.constant -0.0368986279 : f32
    %45 = vector.broadcast %cst_15 : f32 to vector<16x512xf32>
    %46 = arith.addf %44, %45 : vector<16x512xf32>
    %47 = arith.mulf %46, %42 : vector<16x512xf32>
    %cst_16 = arith.constant 0.0837415531 : f32
    %48 = vector.broadcast %cst_16 : f32 to vector<16x512xf32>
    %49 = arith.addf %47, %48 : vector<16x512xf32>
    %50 = arith.mulf %49, %42 : vector<16x512xf32>
    %cst_17 = arith.constant -0.134804055 : f32
    %51 = vector.broadcast %cst_17 : f32 to vector<16x512xf32>
    %52 = arith.addf %50, %51 : vector<16x512xf32>
    %53 = arith.mulf %52, %42 : vector<16x512xf32>
    %cst_18 = arith.constant 0.198798716 : f32
    %54 = vector.broadcast %cst_18 : f32 to vector<16x512xf32>
    %55 = arith.addf %53, %54 : vector<16x512xf32>
    %56 = arith.mulf %55, %42 : vector<16x512xf32>
    %cst_19 = arith.constant -0.333263755 : f32
    %57 = vector.broadcast %cst_19 : f32 to vector<16x512xf32>
    %58 = arith.addf %56, %57 : vector<16x512xf32>
    %59 = arith.mulf %58, %42 : vector<16x512xf32>
    %cst_20 = arith.constant 0.999999344 : f32
    %60 = vector.broadcast %cst_20 : f32 to vector<16x512xf32>
    %61 = arith.addf %59, %60 : vector<16x512xf32>
    %62 = arith.mulf %61, %41 : vector<16x512xf32>
    %cst_21 = arith.constant 1.57079637 : f32
    %63 = vector.broadcast %cst_21 : f32 to vector<16x512xf32>
    %64 = arith.subf %63, %62 : vector<16x512xf32>
    %65 = arith.select %33, %64, %62 : vector<16x512xi1>, vector<16x512xf32>
    %cst_22 = arith.constant 0.000000e+00 : f32
    %66 = vector.broadcast %cst_22 : f32 to vector<16x512xf32>
    %67 = arith.cmpf olt, %30, %66 : vector<16x512xf32>
    %cst_23 = arith.constant 0.000000e+00 : f32
    %68 = vector.broadcast %cst_23 : f32 to vector<16x512xf32>
    %69 = arith.subf %68, %65 : vector<16x512xf32>
    %70 = arith.select %67, %69, %65 : vector<16x512xi1>, vector<16x512xf32>
    %71 = arith.mulf %70, %70 : vector<16x512xf32>
    %72 = tpu.concatenate %70, %71 in 0 : vector<16x512xf32>, vector<16x512xf32> -> vector<32x512xf32>
    %73 = arith.truncf %72 : vector<32x512xf32> to vector<32x512xbf16>
    %c0_24 = arith.constant 0 : index
    %c0_25 = arith.constant 0 : index
    %c0_26 = arith.constant 0 : index
    %74 = vector.load %arg2[%c0_24, %c0_25, %c0_26] : memref<2x16x32xbf16, #tpu.memory_space<vmem>>, vector<1x16x32xbf16>
    %75 = vector.shape_cast %74 : vector<1x16x32xbf16> to vector<16x32xbf16>
    %cst_27 = arith.constant dense<0.000000e+00> : vector<16x512xf32>
    %76 = tpu.matmul %75, %73, %cst_27 {dimension_numbers = #tpu.dot_dimension_numbers<[1], [0], [0], [1], [0, 0, 1, 1], [], []>} : vector<16x32xbf16>, vector<32x512xbf16>, vector<16x512xf32> -> vector<16x512xf32>
    %c1 = arith.constant 1 : index
    %c0_28 = arith.constant 0 : index
    %c0_29 = arith.constant 0 : index
    %77 = vector.load %arg4[%c1, %c0_28, %c0_29] : memref<4x16x1xf32, #tpu.memory_space<vmem>>, vector<1x16x1xf32>
    %78 = vector.shape_cast %77 : vector<1x16x1xf32> to vector<16x1xf32>
    %79 = vector.broadcast %78 : vector<16x1xf32> to vector<16x512xf32>
    %80 = arith.addf %76, %79 : vector<16x512xf32>
    %81 = math.absf %80 : vector<16x512xf32>
    %cst_30 = arith.constant 1.000000e+00 : f32
    %82 = vector.broadcast %cst_30 : f32 to vector<16x512xf32>
    %83 = arith.cmpf ogt, %81, %82 : vector<16x512xf32>
    %cst_31 = arith.constant 1.000000e+00 : f32
    %84 = vector.broadcast %cst_31 : f32 to vector<16x512xf32>
    %85 = arith.maximumf %81, %84 : vector<16x512xf32>
    %86 = tpu.reciprocal %85 {approx = true} : vector<16x512xf32> -> vector<16x512xf32>
    %87 = arith.mulf %85, %86 : vector<16x512xf32>
    %cst_32 = arith.constant 2.000000e+00 : f32
    %88 = vector.broadcast %cst_32 : f32 to vector<16x512xf32>
    %89 = arith.subf %88, %87 : vector<16x512xf32>
    %90 = arith.mulf %86, %89 : vector<16x512xf32>
    %91 = arith.select %83, %90, %81 : vector<16x512xi1>, vector<16x512xf32>
    %92 = arith.mulf %91, %91 : vector<16x512xf32>
    %cst_33 = arith.constant 0.00782548263 : f32
    %93 = vector.broadcast %cst_33 : f32 to vector<16x512xf32>
    %94 = arith.mulf %93, %92 : vector<16x512xf32>
    %cst_34 = arith.constant -0.0368986279 : f32
    %95 = vector.broadcast %cst_34 : f32 to vector<16x512xf32>
    %96 = arith.addf %94, %95 : vector<16x512xf32>
    %97 = arith.mulf %96, %92 : vector<16x512xf32>
    %cst_35 = arith.constant 0.0837415531 : f32
    %98 = vector.broadcast %cst_35 : f32 to vector<16x512xf32>
    %99 = arith.addf %97, %98 : vector<16x512xf32>
    %100 = arith.mulf %99, %92 : vector<16x512xf32>
    %cst_36 = arith.constant -0.134804055 : f32
    %101 = vector.broadcast %cst_36 : f32 to vector<16x512xf32>
    %102 = arith.addf %100, %101 : vector<16x512xf32>
    %103 = arith.mulf %102, %92 : vector<16x512xf32>
    %cst_37 = arith.constant 0.198798716 : f32
    %104 = vector.broadcast %cst_37 : f32 to vector<16x512xf32>
    %105 = arith.addf %103, %104 : vector<16x512xf32>
    %106 = arith.mulf %105, %92 : vector<16x512xf32>
    %cst_38 = arith.constant -0.333263755 : f32
    %107 = vector.broadcast %cst_38 : f32 to vector<16x512xf32>
    %108 = arith.addf %106, %107 : vector<16x512xf32>
    %109 = arith.mulf %108, %92 : vector<16x512xf32>
    %cst_39 = arith.constant 0.999999344 : f32
    %110 = vector.broadcast %cst_39 : f32 to vector<16x512xf32>
    %111 = arith.addf %109, %110 : vector<16x512xf32>
    %112 = arith.mulf %111, %91 : vector<16x512xf32>
    %cst_40 = arith.constant 1.57079637 : f32
    %113 = vector.broadcast %cst_40 : f32 to vector<16x512xf32>
    %114 = arith.subf %113, %112 : vector<16x512xf32>
    %115 = arith.select %83, %114, %112 : vector<16x512xi1>, vector<16x512xf32>
    %cst_41 = arith.constant 0.000000e+00 : f32
    %116 = vector.broadcast %cst_41 : f32 to vector<16x512xf32>
    %117 = arith.cmpf olt, %80, %116 : vector<16x512xf32>
    %cst_42 = arith.constant 0.000000e+00 : f32
    %118 = vector.broadcast %cst_42 : f32 to vector<16x512xf32>
    %119 = arith.subf %118, %115 : vector<16x512xf32>
    %120 = arith.select %117, %119, %115 : vector<16x512xi1>, vector<16x512xf32>
    %121 = arith.mulf %120, %120 : vector<16x512xf32>
    %122 = tpu.concatenate %120, %121 in 0 : vector<16x512xf32>, vector<16x512xf32> -> vector<32x512xf32>
    %123 = arith.truncf %122 : vector<32x512xf32> to vector<32x512xbf16>
    %c1_43 = arith.constant 1 : index
    %c0_44 = arith.constant 0 : index
    %c0_45 = arith.constant 0 : index
    %124 = vector.load %arg2[%c1_43, %c0_44, %c0_45] : memref<2x16x32xbf16, #tpu.memory_space<vmem>>, vector<1x16x32xbf16>
    %125 = vector.shape_cast %124 : vector<1x16x32xbf16> to vector<16x32xbf16>
    %cst_46 = arith.constant dense<0.000000e+00> : vector<16x512xf32>
    %126 = tpu.matmul %125, %123, %cst_46 {dimension_numbers = #tpu.dot_dimension_numbers<[1], [0], [0], [1], [0, 0, 1, 1], [], []>} : vector<16x32xbf16>, vector<32x512xbf16>, vector<16x512xf32> -> vector<16x512xf32>
    %c2 = arith.constant 2 : index
    %c0_47 = arith.constant 0 : index
    %c0_48 = arith.constant 0 : index
    %127 = vector.load %arg4[%c2, %c0_47, %c0_48] : memref<4x16x1xf32, #tpu.memory_space<vmem>>, vector<1x16x1xf32>
    %128 = vector.shape_cast %127 : vector<1x16x1xf32> to vector<16x1xf32>
    %129 = vector.broadcast %128 : vector<16x1xf32> to vector<16x512xf32>
    %130 = arith.addf %126, %129 : vector<16x512xf32>
    %131 = math.absf %130 : vector<16x512xf32>
    %cst_49 = arith.constant 1.000000e+00 : f32
    %132 = vector.broadcast %cst_49 : f32 to vector<16x512xf32>
    %133 = arith.cmpf ogt, %131, %132 : vector<16x512xf32>
    %cst_50 = arith.constant 1.000000e+00 : f32
    %134 = vector.broadcast %cst_50 : f32 to vector<16x512xf32>
    %135 = arith.maximumf %131, %134 : vector<16x512xf32>
    %136 = tpu.reciprocal %135 {approx = true} : vector<16x512xf32> -> vector<16x512xf32>
    %137 = arith.mulf %135, %136 : vector<16x512xf32>
    %cst_51 = arith.constant 2.000000e+00 : f32
    %138 = vector.broadcast %cst_51 : f32 to vector<16x512xf32>
    %139 = arith.subf %138, %137 : vector<16x512xf32>
    %140 = arith.mulf %136, %139 : vector<16x512xf32>
    %141 = arith.select %133, %140, %131 : vector<16x512xi1>, vector<16x512xf32>
    %142 = arith.mulf %141, %141 : vector<16x512xf32>
    %cst_52 = arith.constant 0.00782548263 : f32
    %143 = vector.broadcast %cst_52 : f32 to vector<16x512xf32>
    %144 = arith.mulf %143, %142 : vector<16x512xf32>
    %cst_53 = arith.constant -0.0368986279 : f32
    %145 = vector.broadcast %cst_53 : f32 to vector<16x512xf32>
    %146 = arith.addf %144, %145 : vector<16x512xf32>
    %147 = arith.mulf %146, %142 : vector<16x512xf32>
    %cst_54 = arith.constant 0.0837415531 : f32
    %148 = vector.broadcast %cst_54 : f32 to vector<16x512xf32>
    %149 = arith.addf %147, %148 : vector<16x512xf32>
    %150 = arith.mulf %149, %142 : vector<16x512xf32>
    %cst_55 = arith.constant -0.134804055 : f32
    %151 = vector.broadcast %cst_55 : f32 to vector<16x512xf32>
    %152 = arith.addf %150, %151 : vector<16x512xf32>
    %153 = arith.mulf %152, %142 : vector<16x512xf32>
    %cst_56 = arith.constant 0.198798716 : f32
    %154 = vector.broadcast %cst_56 : f32 to vector<16x512xf32>
    %155 = arith.addf %153, %154 : vector<16x512xf32>
    %156 = arith.mulf %155, %142 : vector<16x512xf32>
    %cst_57 = arith.constant -0.333263755 : f32
    %157 = vector.broadcast %cst_57 : f32 to vector<16x512xf32>
    %158 = arith.addf %156, %157 : vector<16x512xf32>
    %159 = arith.mulf %158, %142 : vector<16x512xf32>
    %cst_58 = arith.constant 0.999999344 : f32
    %160 = vector.broadcast %cst_58 : f32 to vector<16x512xf32>
    %161 = arith.addf %159, %160 : vector<16x512xf32>
    %162 = arith.mulf %161, %141 : vector<16x512xf32>
    %cst_59 = arith.constant 1.57079637 : f32
    %163 = vector.broadcast %cst_59 : f32 to vector<16x512xf32>
    %164 = arith.subf %163, %162 : vector<16x512xf32>
    %165 = arith.select %133, %164, %162 : vector<16x512xi1>, vector<16x512xf32>
    %cst_60 = arith.constant 0.000000e+00 : f32
    %166 = vector.broadcast %cst_60 : f32 to vector<16x512xf32>
    %167 = arith.cmpf olt, %130, %166 : vector<16x512xf32>
    %cst_61 = arith.constant 0.000000e+00 : f32
    %168 = vector.broadcast %cst_61 : f32 to vector<16x512xf32>
    %169 = arith.subf %168, %165 : vector<16x512xf32>
    %170 = arith.select %167, %169, %165 : vector<16x512xi1>, vector<16x512xf32>
    %171 = arith.mulf %170, %170 : vector<16x512xf32>
    %172 = tpu.concatenate %170, %171 in 0 : vector<16x512xf32>, vector<16x512xf32> -> vector<32x512xf32>
    %173 = arith.truncf %172 : vector<32x512xf32> to vector<32x512xbf16>
    %c0_62 = arith.constant 0 : index
    %c0_63 = arith.constant 0 : index
    %174 = vector.load %arg3[%c0_62, %c0_63] : memref<8x32xbf16, #tpu.memory_space<vmem>>, vector<8x32xbf16>
    %cst_64 = arith.constant dense<0.000000e+00> : vector<8x512xf32>
    %175 = tpu.matmul %174, %173, %cst_64 {dimension_numbers = #tpu.dot_dimension_numbers<[1], [0], [0], [1], [0, 0, 1, 1], [], []>} : vector<8x32xbf16>, vector<32x512xbf16>, vector<8x512xf32> -> vector<8x512xf32>
    %176 = vector.extract_strided_slice %175 {offsets = [0, 0], sizes = [1, 512], strides = [1, 1]} : vector<8x512xf32> to vector<1x512xf32>
    %c3 = arith.constant 3 : index
    %c0_65 = arith.constant 0 : index
    %c0_66 = arith.constant 0 : index
    %177 = vector.load %arg4[%c3, %c0_65, %c0_66] : memref<4x16x1xf32, #tpu.memory_space<vmem>>, vector<1x16x1xf32>
    %178 = vector.shape_cast %177 : vector<1x16x1xf32> to vector<16x1xf32>
    %179 = vector.extract_strided_slice %178 {offsets = [0, 0], sizes = [1, 1], strides = [1, 1]} : vector<16x1xf32> to vector<1x1xf32>
    %180 = vector.broadcast %179 : vector<1x1xf32> to vector<1x512xf32>
    %181 = arith.addf %176, %180 : vector<1x512xf32>
    %182 = arith.negf %181 : vector<1x512xf32>
    %183 = math.exp %182 : vector<1x512xf32>
    %cst_67 = arith.constant 1.000000e+00 : f32
    %184 = vector.broadcast %cst_67 : f32 to vector<1x512xf32>
    %185 = arith.addf %184, %183 : vector<1x512xf32>
    %186 = arith.divf %184, %185 : vector<1x512xf32>
    %187 = arith.index_cast %3 : i32 to index
    %c0_68 = arith.constant 0 : index
    %188 = vector.load %arg5[%187, %c0_68] : memref<1x512xf32, #tpu.memory_space<vmem>>, vector<1x512xf32>
    tpu.vector_store %arg5[%187, %c0_68], %186 {strides = array<i32>} : memref<1x512xf32, #tpu.memory_space<vmem>>, vector<1x512xf32>,
    %c1_i32_69 = arith.constant 1 : i32
    return
  }
  func.func @transform_0(%arg0: i32) -> (i32, i32) {
    %c0_i32 = arith.constant 0 : i32
    %c0_i32_0 = arith.constant 0 : i32
    %c0_i32_1 = arith.constant 0 : i32
    return %c0_i32, %c0_i32_0 : i32, i32
  }
  func.func @transform_1(%arg0: i32) -> (i32, i32, i32) {
    %c0_i32 = arith.constant 0 : i32
    %c0_i32_0 = arith.constant 0 : i32
    %c0_i32_1 = arith.constant 0 : i32
    %c0_i32_2 = arith.constant 0 : i32
    return %c0_i32, %c0_i32_0, %c0_i32_1 : i32, i32, i32
  }
  func.func @transform_2(%arg0: i32) -> (i32, i32) {
    %c0_i32 = arith.constant 0 : i32
    %c0_i32_0 = arith.constant 0 : i32
    %c0_i32_1 = arith.constant 0 : i32
    return %c0_i32, %c0_i32_0 : i32, i32
  }
  func.func @transform_3(%arg0: i32) -> (i32, i32, i32) {
    %c0_i32 = arith.constant 0 : i32
    %c0_i32_0 = arith.constant 0 : i32
    %c0_i32_1 = arith.constant 0 : i32
    %c0_i32_2 = arith.constant 0 : i32
    return %c0_i32, %c0_i32_0, %c0_i32_1 : i32, i32, i32
  }
  func.func @transform_4(%arg0: i32) -> (i32, i32) {
    %c0_i32 = arith.constant 0 : i32
    %c0_i32_0 = arith.constant 0 : i32
    return %arg0, %c0_i32 : i32, i32
  }
}

</mosaic_0001>

<bundles_post_ra>
// kernel: tpu_custom_call.1
= control target key start
LH: loop header
LB: loop body
LE: loop exit
PB: predicated region body
PF: predicated region fallthrough
CT: control target
= control target key end

     0   :  { %v19_v0 = vlaneseq  ;;  %v1475_v2 = vmov 0.0   ;;  %v1476_v4 = vmov 0   ;;  %s2223_s0 = inlined_call_operand.vmem [shape: f32[16,2], index: 0, kind: input, shape index: {}]   ;;  %s2224_s1 = inlined_call_operand.vmem [shape: bf16[2,16,32], index: 1, kind: input, shape index: {}]   ;;  %s2225_s2 = inlined_call_operand.vmem [shape: bf16[8,32], index: 2, kind: input, shape index: {}]   ;;  %s2226_s3 = inlined_call_operand.vmem [shape: f32[4,16,1], index: 3, kind: input, shape index: {}]   ;;  %s2227_s4 = inlined_call_operand.hbm [shape: f32[1,512], index: 4, kind: output, shape index: {}]  }
   0x1   :  { %v73_v1 = vld [vmem:[%s2226_s3] sm:$0xff]  ;;  %169 = vmatprep.mubr.f32.mxu0 %v1475_v2  ;;  %246 = vmatprep.mubr.f32.mxu1 %v1475_v2 }
   0x2   :  { %v20_v3 = vand.u32 127, %v19_v0  ;;  %1383 = vset.pattern.permute.xlu0 %v1476_v4  ;;  %1384 = vset.pattern.permute.xlu1 %v1476_v4 }
   0x3   :  { %77 = vperm.xlu0 %1383, %v73_v1  }
   0x4   :  { %9 = vsyncpa [#allocation3], 0  ;;  %v21_v5 = vadd.s32 128, %v20_v3  ;;  %v23_v6 = vadd.s32 384, %v20_v3  ;;  %v30_v7 = vshra.s32 %v20_v3, 4  ;;  %v34_v8 = vand.u32 15, %v20_v3 }
   0x5   :  { %v74_v9 = vld [vmem:[%s2226_s3 + $0x8] sm:$0xff]  ;;  %vm66_vm0 = vcmask 1040384   ;;  %v22_v10 = vadd.s32 256, %v20_v3  ;;  %vm92_vm1 = vcmask 1041408   ;;  %v1367_v23 = vld [vmem:[%s2226_s3 + $0x20] sm:$0xff]  ;;  %v1374_v32 = vld [vmem:[%s2226_s3 + $0x30] sm:$0xff] }
   0x6   :  { %v31_v11 = vshra.s32 %v21_v5, 4  ;;  %v35_v12 = vand.u32 15, %v21_v5  ;;  %v33_v13 = vshra.s32 %v23_v6, 4  ;;  %v37_v14 = vand.u32 15, %v23_v6  ;;  %v71_v50 = vld [vmem:[%s2223_s0] sm:$0xff]  ;;  %v72_v52 = vld [vmem:[%s2223_s0 + $0x8] sm:$0xff] }
   0x7   :  { %v38_v15 = vand.u32 15, %v30_v7  ;;  %v54_v16 = vcvt.s32.f32 %v34_v8  ;;  %v32_v17 = vshra.s32 %v22_v10, 4  ;;  %v36_v18 = vand.u32 15, %v22_v10  ;;  %82 = vperm.xlu0 %1383, %v74_v9   ;;  %v1360_v53 = vld [vmem:[%s2226_s3 + $0x10] sm:$0xff]  ;;  %v1361_v54 = vld [vmem:[%s2226_s3 + $0x18] sm:$0xff]  ;;  %v1368_v55 = vld [vmem:[%s2226_s3 + $0x28] sm:$0xff] }
   0x8   :  { %v39_v19 = vand.u32 15, %v31_v11  ;;  %v55_v20 = vcvt.s32.f32 %v35_v12  ;;  %v41_v21 = vand.u32 15, %v33_v13  ;;  %v57_v22 = vcvt.s32.f32 %v37_v14  ;;  %498 = vperm.xlu1 %1384, %v1360_v53  }
   0x9   :  { %v42_v24 = vcvt.s32.f32 %v38_v15  ;;  %v58_v25 = vmul.f32 0.2309401, %v54_v16  ;;  %v40_v26 = vand.u32 15, %v32_v17  ;;  %v56_v27 = vcvt.s32.f32 %v36_v18 }
   0xa   :  { %v43_v28 = vcvt.s32.f32 %v39_v19  ;;  %v59_v29 = vmul.f32 0.2309401, %v55_v20  ;;  %v45_v30 = vcvt.s32.f32 %v41_v21  ;;  %v61_v31 = vmul.f32 0.2309401, %v57_v22 }
   0xb   :  { %v46_v33 = vmul.f32 0.2309401, %v42_v24  ;;  %v1348_v34 = vadd.f32 -1.7320508, %v58_v25  ;;  %v44_v35 = vcvt.s32.f32 %v40_v26  ;;  %v60_v36 = vmul.f32 0.2309401, %v56_v27  ;;  %841 = vperm.xlu0 %1383, %v1367_v23  }
   0xc   :  { %v47_v37 = vmul.f32 0.2309401, %v43_v28  ;;  %v1349_v38 = vadd.f32 -1.7320508, %v59_v29  ;;  %v49_v39 = vmul.f32 0.2309401, %v45_v30  ;;  %503 = vperm.xlu1 %1384, %v1361_v54  }
   0xd   :  { %v1351_v40 = vadd.f32 -1.7320508, %v61_v31  ;;  %v1344_v41 = vadd.f32 -1.7320508, %v46_v33  ;;  %v48_v42 = vmul.f32 0.2309401, %v44_v35 }
   0xe   :  { %v1345_v43 = vadd.f32 -1.7320508, %v47_v37  ;;  %v1347_v44 = vadd.f32 -1.7320508, %v49_v39  ;;  %v1350_v45 = vadd.f32 -1.7320508, %v60_v36 }
   0xf   :  { %v67_v46 = vsel %vm66_vm0, %v1344_v41, %v1348_v34  ;;  %v1346_v47 = vadd.f32 -1.7320508, %v48_v42  ;;  %1265 = vperm.xlu0 %1383, %v1374_v32   ;;  %vm85_vm2 = vcmask 15360  }
  0x10   :  { %v68_v48 = vsel %vm66_vm0, %v1345_v43, %v1349_v38  ;;  %v70_v49 = vsel %vm66_vm0, %v1347_v44, %v1351_v40  ;;  %846 = vperm.xlu1 %1384, %v1368_v55  }
  0x11   :  { %1352 = vmatprep.subr.msk.mxu0 %vm92_vm1, %v68_v48  ;;  %1356 = vmatprep.subr.msk.mxu1 %vm92_vm1, %v70_v49  ;;  %v69_v51 = vsel %vm66_vm0, %v1346_v47, %v1350_v45 }
  0x12   :  { %1353 = vmatpush1.msk.msra.mxu0 %vm92_vm1, %v67_v46  ;;  %1357 = vmatpush1.msk.msra.mxu1 %vm92_vm1, %v69_v51  ;;  %vm511_vm1 = vcmask 261120  }
  0x13   :  { %1354 = vmatmul.mubr.msk.f32.vlgmr.msra.gmra.mrb[0].mxu0 %vm85_vm2, %v71_v50  ;;  %1358 = vmatmul.mubr.msk.f32.vlgmr.msra.gmra.mrb[0].mxu1 %vm85_vm2, %v71_v50 }
  0x14   :  { %175 = vmatprep.mubr.f32.mxu0 %v1475_v2  ;;  %252 = vmatprep.mubr.f32.mxu1 %v1475_v2 }
  0x17   :  { %1355 = vmatmul.mubr.msk.f32.gmra.mrb[2].mxu0 %vm85_vm2, %v72_v52  ;;  %1359 = vmatmul.mubr.msk.f32.gmra.mrb[2].mxu1 %vm85_vm2, %v72_v52 }
  0x18   :  { %547 = vmatprep.mubr.bf16.mxu0 %v1476_v4  ;;  %590 = vmatprep.mubr.bf16.mxu1 %v1476_v4 }
  0x82   :  { %v78_v56 = vpop.permute.xlu0 %77 }
  0x86   :  { %v83_v5 = vpop.permute.xlu0 %82 }
  0xe6   :  { %v171_v57 = vpop.f32.mrb[0].mxu0  ;;  %v248_v58 = vpop.f32.mrb[0].mxu1 }
  0xe7   :  { %v1548_v59 = vadd.f32 %v171_v57, %v78_v56  ;;  %v1550_v60 = vadd.f32 %v248_v58, %v78_v56  ;;  %v173_v61 = vpop.f32.mrb[1].mxu0  ;;  %v250_v62 = vpop.f32.mrb[1].mxu1 }
  0xe8   :  { %v1552_v63 = vadd.f32 %v173_v61, %v78_v56  ;;  %v1554_v1 = vadd.f32 %v250_v62, %v78_v56 }
  0xe9   :  { %v1557_v2 = vand.u32 2147483647, %v1548_v59  ;;  %v1560_v3 = vand.u32 2147483647, %v1550_v60  ;;  %vm451_vm11 = vcmp.lt.f32.partialorder %v1548_v59, 0.0  ;;  %vm453_vm12 = vcmp.lt.f32.partialorder %v1550_v60, 0.0 }
  0xea   :  { %v1563_v6 = vand.u32 2147483647, %v1552_v63  ;;  %v1566_v7 = vand.u32 2147483647, %v1554_v1  ;;  %v177_v10 = vpop.f32.mrb[2].mxu0  ;;  %v254_v11 = vpop.f32.mrb[2].mxu1 }
  0xeb   :  { %v275_v8 = vmax.f32 %v1557_v2, 1.0  ;;  %v277_v9 = vmax.f32 %v1560_v3, 1.0  ;;  %v179_v14 = vpop.f32.mrb[3].mxu0  ;;  %v256_v15 = vpop.f32.mrb[3].mxu1  ;;  %v1572_v16 = vadd.f32 %v177_v10, %v83_v5  ;;  %v1574_v17 = vadd.f32 %v254_v11, %v83_v5 }
  0xec   :  { %v276_v12 = vmax.f32 %v1563_v6, 1.0  ;;  %v278_v13 = vmax.f32 %v1566_v7, 1.0  ;;  %v1576_v18 = vadd.f32 %v179_v14, %v83_v5  ;;  %v1578_v19 = vadd.f32 %v256_v15, %v83_v5 }
  0xed   :  { %1387 = vrcp.f32 %v275_v8  ;;  %v1581_v20 = vand.u32 2147483647, %v1572_v16  ;;  %v1584_v21 = vand.u32 2147483647, %v1574_v17  ;;  %vm267_vm3 = vcmp.gt.f32.partialorder %v1557_v2, 1.0 }
  0xee   :  { %1389 = vrcp.f32 %v277_v9  ;;  %v1587_v22 = vand.u32 2147483647, %v1576_v18  ;;  %v1593_v26 = vand.u32 2147483647, %v1578_v19  ;;  %vm269_vm4 = vcmp.gt.f32.partialorder %v1560_v3, 1.0 }
  0xef   :  { %1391 = vrcp.f32 %v276_v12  ;;  %v279_v23 = vmax.f32 %v1581_v20, 1.0  ;;  %v281_v24 = vmax.f32 %v1584_v21, 1.0  ;;  %vm268_vm5 = vcmp.gt.f32.partialorder %v1563_v6, 1.0 }
  0xf0   :  { %1393 = vrcp.f32 %v278_v13  ;;  %v280_v25 = vmax.f32 %v1587_v22, 1.0  ;;  %v282_v27 = vmax.f32 %v1593_v26, 1.0  ;;  %vm270_vm6 = vcmp.gt.f32.partialorder %v1566_v7, 1.0 }
  0xf1   :  { %1395 = vrcp.f32 %v279_v23  ;;  %vm271_vm7 = vcmp.gt.f32.partialorder %v1581_v20, 1.0  ;;  %vm273_vm8 = vcmp.gt.f32.partialorder %v1584_v21, 1.0  ;;  %vm272_vm9 = vcmp.gt.f32.partialorder %v1587_v22, 1.0 }
  0xf2   :  { %1397 = vrcp.f32 %v281_v24  ;;  %vm274_vm10 = vcmp.gt.f32.partialorder %v1593_v26, 1.0  ;;  %vm452_vm13 = vcmp.lt.f32.partialorder %v1552_v63, 0.0  ;;  %vm455_vm14 = vcmp.lt.f32.partialorder %v1572_v16, 0.0 }
  0xf3   :  { %1399 = vrcp.f32 %v280_v25  ;;  %vm457_vm15 = vcmp.lt.f32.partialorder %v1574_v17, 0.0  ;;  %vm456_vm0 = vcmp.lt.f32.partialorder %v1576_v18, 0.0  ;;  %v1385_v18 = vld [vmem:[%s2224_s1] sm:$0xff]   ;;  %vm454_vm2 = vcmp.lt.f32.partialorder %v1554_v1, 0.0  ;;  %v499_v1 = vpop.permute.xlu1 %498 }
  0xf4   :  { %1401 = vrcp.f32 %v282_v27 }
  0xf7   :  { %v1388_v28 = vpop.eup %1387 }
  0xf8   :  { %v1390_v29 = vpop.eup %1389  ;;  %v291_v30 = vmul.f32 %v1388_v28, %v275_v8 }
  0xf9   :  { %v1392_v31 = vpop.eup %1391  ;;  %v293_v32 = vmul.f32 %v1390_v29, %v277_v9 }
  0xfa   :  { %v1394_v33 = vpop.eup %1393  ;;  %v299_v34 = vsub.f32 2.0, %v291_v30  ;;  %v292_v35 = vmul.f32 %v1392_v31, %v276_v12 }
  0xfb   :  { %v301_v36 = vsub.f32 2.0, %v293_v32  ;;  %v294_v37 = vmul.f32 %v1394_v33, %v278_v13  ;;  %v1396_v40 = vpop.eup %1395 }
  0xfc   :  { %v307_v38 = vmul.f32 %v1388_v28, %v299_v34  ;;  %v300_v39 = vsub.f32 2.0, %v292_v35  ;;  %v1398_v43 = vpop.eup %1397  ;;  %v295_v46 = vmul.f32 %v1396_v40, %v279_v23 }
  0xfd   :  { %v309_v41 = vmul.f32 %v1390_v29, %v301_v36  ;;  %v302_v42 = vsub.f32 2.0, %v294_v37  ;;  %v1400_v47 = vpop.eup %1399  ;;  %v297_v51 = vmul.f32 %v1398_v43, %v281_v24 }
  0xfe   :  { %v1605_v44 = vsel %vm267_vm3, %v307_v38, %v1557_v2  ;;  %v308_v45 = vmul.f32 %v1392_v31, %v300_v39  ;;  %v1402_v52 = vpop.eup %1401  ;;  %v303_v55 = vsub.f32 2.0, %v295_v46  ;;  %v296_v56 = vmul.f32 %v1400_v47, %v280_v25 }
  0xff   :  { %v1610_v48 = vmul.f32 %v1605_v44, %v1605_v44  ;;  %v1615_v49 = vsel %vm269_vm4, %v309_v41, %v1560_v3  ;;  %v310_v50 = vmul.f32 %v1394_v33, %v302_v42  ;;  %v305_v62 = vsub.f32 2.0, %v297_v51 }
 0x100   :  { %v1619_v53 = vmul.f32 %v1615_v49, %v1615_v49  ;;  %v1624_v54 = vsel %vm268_vm5, %v308_v45, %v1563_v6  ;;  %v311_v9 = vmul.f32 %v1396_v40, %v303_v55  ;;  %v304_v10 = vsub.f32 2.0, %v296_v56 }
 0x101   :  { %v331_v57 = vmul.f32 0.007825483, %v1610_v48  ;;  %v1629_v58 = vmul.f32 %v1624_v54, %v1624_v54  ;;  %v1634_v61 = vsel %vm270_vm6, %v310_v50, %v1566_v7  ;;  %v313_v13 = vmul.f32 %v1398_v43, %v305_v62 }
 0x102   :  { %v333_v5 = vmul.f32 0.007825483, %v1619_v53  ;;  %v1639_v8 = vmul.f32 %v1634_v61, %v1634_v61  ;;  %v298_v14 = vmul.f32 %v1402_v52, %v282_v27  ;;  %v1647_v24 = vsel %vm271_vm7, %v311_v9, %v1581_v20 }
 0x103   :  { %v339_v11 = vadd.f32 -0.036898628, %v331_v57  ;;  %v332_v12 = vmul.f32 0.007825483, %v1629_v58  ;;  %v312_v25 = vmul.f32 %v1400_v47, %v304_v10  ;;  %v1652_v30 = vmul.f32 %v1647_v24, %v1647_v24 }
 0x104   :  { %v341_v15 = vadd.f32 -0.036898628, %v333_v5  ;;  %v334_v23 = vmul.f32 0.007825483, %v1639_v8  ;;  %v1657_v27 = vsel %vm273_vm8, %v313_v13, %v1584_v21  ;;  %v306_v42 = vsub.f32 2.0, %v298_v14 }
 0x105   :  { %v347_v28 = vmul.f32 %v339_v11, %v1610_v48  ;;  %v340_v29 = vadd.f32 -0.036898628, %v332_v12  ;;  %v1662_v33 = vmul.f32 %v1657_v27, %v1657_v27  ;;  %v1667_v34 = vsel %vm272_vm9, %v312_v25, %v1587_v22 }
 0x106   :  { %v349_v31 = vmul.f32 %v341_v15, %v1619_v53  ;;  %v342_v32 = vadd.f32 -0.036898628, %v334_v23  ;;  %v335_v37 = vmul.f32 0.007825483, %v1652_v30  ;;  %v1673_v38 = vmul.f32 %v1667_v34, %v1667_v34 }
 0x107   :  { %v355_v35 = vadd.f32 0.08374155, %v347_v28  ;;  %v348_v36 = vmul.f32 %v340_v29, %v1629_v58  ;;  %v337_v41 = vmul.f32 0.007825483, %v1662_v33  ;;  %v314_v56 = vmul.f32 %v1402_v52, %v306_v42 }
 0x108   :  { %v357_v39 = vadd.f32 0.08374155, %v349_v31  ;;  %v350_v40 = vmul.f32 %v342_v32, %v1639_v8  ;;  %v343_v46 = vadd.f32 -0.036898628, %v335_v37  ;;  %v336_v47 = vmul.f32 0.007825483, %v1673_v38 }
 0x109   :  { %v363_v43 = vmul.f32 %v355_v35, %v1610_v48  ;;  %v356_v45 = vadd.f32 0.08374155, %v348_v36  ;;  %v345_v55 = vadd.f32 -0.036898628, %v337_v41  ;;  %v1687_v13 = vsel %vm274_vm10, %v314_v56, %v1593_v26 }
 0x10a   :  { %v365_v50 = vmul.f32 %v357_v39, %v1619_v53  ;;  %v358_v51 = vadd.f32 0.08374155, %v350_v40  ;;  %v351_v5 = vmul.f32 %v343_v46, %v1652_v30  ;;  %v344_v9 = vadd.f32 -0.036898628, %v336_v47 }
 0x10b   :  { %v371_v57 = vadd.f32 -0.13480406, %v363_v43  ;;  %v364_v62 = vmul.f32 %v356_v45, %v1629_v58  ;;  %v353_v12 = vmul.f32 %v345_v55, %v1662_v33  ;;  %v1694_v31 = vmul.f32 %v1687_v13, %v1687_v13 }
 0x10c   :  { %v373_v10 = vadd.f32 -0.13480406, %v365_v50  ;;  %v366_v11 = vmul.f32 %v358_v51, %v1639_v8  ;;  %v359_v52 = vadd.f32 0.08374155, %v351_v5  ;;  %v352_v23 = vmul.f32 %v344_v9, %v1673_v38 }
 0x10d   :  { %v379_v14 = vmul.f32 %v371_v57, %v1610_v48  ;;  %v372_v15 = vadd.f32 -0.13480406, %v364_v62  ;;  %v361_v29 = vadd.f32 0.08374155, %v353_v12  ;;  %v338_v42 = vmul.f32 0.007825483, %v1694_v31 }
 0x10e   :  { %v381_v25 = vmul.f32 %v373_v10, %v1619_v53  ;;  %v374_v28 = vadd.f32 -0.13480406, %v366_v11  ;;  %v367_v36 = vmul.f32 %v359_v52, %v1652_v30  ;;  %v360_v37 = vadd.f32 0.08374155, %v352_v23 }
 0x10f   :  { %v387_v32 = vadd.f32 0.19879872, %v379_v14  ;;  %v380_v35 = vmul.f32 %v372_v15, %v1629_v58  ;;  %v369_v41 = vmul.f32 %v361_v29, %v1662_v33  ;;  %v346_v56 = vadd.f32 -0.036898628, %v338_v42 }
 0x110   :  { %v389_v39 = vadd.f32 0.19879872, %v381_v25  ;;  %v382_v40 = vmul.f32 %v374_v28, %v1639_v8  ;;  %v375_v46 = vadd.f32 -0.13480406, %v367_v36  ;;  %v368_v47 = vmul.f32 %v360_v37, %v1673_v38 }
 0x111   :  { %v395_v43 = vmul.f32 %v387_v32, %v1610_v48  ;;  %v388_v45 = vadd.f32 0.19879872, %v380_v35  ;;  %v377_v55 = vadd.f32 -0.13480406, %v369_v41  ;;  %v354_v14 = vmul.f32 %v346_v56, %v1694_v31 }
 0x112   :  { %v397_v50 = vmul.f32 %v389_v39, %v1619_v53  ;;  %v390_v51 = vadd.f32 0.19879872, %v382_v40  ;;  %v383_v5 = vmul.f32 %v375_v46, %v1652_v30  ;;  %v376_v9 = vadd.f32 -0.13480406, %v368_v47 }
 0x113   :  { %v403_v57 = vadd.f32 -0.33326375, %v395_v43  ;;  %v396_v62 = vmul.f32 %v388_v45, %v1629_v58  ;;  %v385_v12 = vmul.f32 %v377_v55, %v1662_v33  ;;  %v362_v35 = vadd.f32 0.08374155, %v354_v14 }
 0x114   :  { %v405_v10 = vadd.f32 -0.33326375, %v397_v50  ;;  %v398_v11 = vmul.f32 %v390_v51, %v1639_v8  ;;  %v391_v23 = vadd.f32 0.19879872, %v383_v5  ;;  %v384_v25 = vmul.f32 %v376_v9, %v1673_v38 }
 0x115   :  { %v411_v15 = vmul.f32 %v403_v57, %v1610_v48  ;;  %v404_v52 = vadd.f32 -0.33326375, %v396_v62  ;;  %v393_v32 = vadd.f32 0.19879872, %v385_v12  ;;  %v370_v43 = vmul.f32 %v362_v35, %v1694_v31 }
 0x116   :  { %v413_v28 = vmul.f32 %v405_v10, %v1619_v53  ;;  %v406_v29 = vadd.f32 -0.33326375, %v398_v11  ;;  %v399_v39 = vmul.f32 %v391_v23, %v1652_v30  ;;  %v392_v40 = vadd.f32 0.19879872, %v384_v25 }
 0x117   :  { %v419_v36 = vadd.f32 0.99999934, %v411_v15  ;;  %v412_v37 = vmul.f32 %v404_v52, %v1629_v58  ;;  %v401_v48 = vmul.f32 %v393_v32, %v1662_v33  ;;  %v378_v58 = vadd.f32 -0.13480406, %v370_v43 }
 0x118   :  { %v421_v41 = vadd.f32 0.99999934, %v413_v28  ;;  %v414_v42 = vmul.f32 %v406_v29, %v1639_v8  ;;  %v407_v53 = vadd.f32 -0.33326375, %v399_v39  ;;  %v400_v47 = vmul.f32 %v392_v40, %v1673_v38 }
 0x119   :  { %v427_v45 = vmul.f32 %v419_v36, %v1605_v44  ;;  %v420_v46 = vadd.f32 0.99999934, %v412_v37  ;;  %v409_v51 = vadd.f32 -0.33326375, %v401_v48 }
 0x11a   :  { %v429_v50 = vmul.f32 %v421_v41, %v1615_v49  ;;  %v415_v57 = vmul.f32 %v407_v53, %v1652_v30  ;;  %v408_v8 = vadd.f32 -0.33326375, %v400_v47  ;;  %v422_v5 = vadd.f32 0.99999934, %v414_v42 }
 0x11b   :  { %v435_v55 = vsub.f32 1.5707964, %v427_v45  ;;  %v428_v56 = vmul.f32 %v420_v46, %v1624_v54  ;;  %v417_v9 = vmul.f32 %v409_v51, %v1662_v33  ;;  %v386_v54 = vmul.f32 %v378_v58, %v1694_v31 }
 0x11c   :  { %v437_v62 = vsub.f32 1.5707964, %v429_v50  ;;  %v423_v11 = vadd.f32 0.99999934, %v415_v57  ;;  %v416_v12 = vmul.f32 %v408_v8, %v1673_v38  ;;  %v430_v3 = vmul.f32 %v422_v5, %v1634_v61 }
 0x11d   :  { %v443_v44 = vsel %vm267_vm3, %v435_v55, %v427_v45  ;;  %v436_v10 = vsub.f32 1.5707964, %v428_v56  ;;  %v425_v14 = vadd.f32 0.99999934, %v417_v9  ;;  %v394_v29 = vadd.f32 0.19879872, %v386_v54 }
 0x11e   :  { %v445_v49 = vsel %vm269_vm4, %v437_v62, %v429_v50  ;;  %v459_v15 = vsub.f32 0.0, %v443_v44  ;;  %v431_v52 = vmul.f32 %v423_v11, %v1647_v24  ;;  %v424_v33 = vadd.f32 0.99999934, %v416_v12 }
 0x11f   :  { %v444_v30 = vsel %vm268_vm5, %v436_v10, %v428_v56  ;;  %v433_v2 = vmul.f32 %v425_v14, %v1657_v27  ;;  %v461_v38 = vsub.f32 0.0, %v445_v49  ;;  %v438_v36 = vsub.f32 1.5707964, %v430_v3 }
 0x120   :  { %v439_v23 = vsub.f32 1.5707964, %v431_v52  ;;  %v460_v25 = vsub.f32 0.0, %v444_v30  ;;  %v432_v28 = vmul.f32 %v424_v33, %v1667_v34  ;;  %v467_v24 = vsel %vm451_vm11, %v459_v15, %v443_v44 }
 0x121   :  { %v441_v6 = vsub.f32 1.5707964, %v433_v2  ;;  %v469_v61 = vsel %vm453_vm12, %v461_v38, %v445_v49  ;;  %v402_v34 = vmul.f32 %v394_v29, %v1694_v31  ;;  %v475_v39 = vmul.f32 %v467_v24, %v467_v24  ;;  %v504_v49 = vpop.permute.xlu1 %503 }
 0x122   :  { %v447_v59 = vsel %vm271_vm7, %v439_v23, %v431_v52  ;;  %v440_v35 = vsub.f32 1.5707964, %v432_v28  ;;  %v468_v20 = vsel %vm452_vm13, %v460_v25, %v444_v30  ;;  %v477_v43 = vmul.f32 %v469_v61, %v469_v61 }
 0x123   :  { %v463_v27 = vsub.f32 0.0, %v447_v59  ;;  %v449_v32 = vsel %vm273_vm8, %v441_v6, %v433_v2  ;;  %v410_v53 = vadd.f32 -0.33326375, %v402_v34  ;;  %v476_v47 = vmul.f32 %v468_v20, %v468_v20 }
 0x124   :  { %v465_v37 = vsub.f32 0.0, %v449_v32  ;;  %v448_v21 = vsel %vm272_vm9, %v440_v35, %v432_v28  ;;  %v446_v55 = vsel %vm270_vm6, %v438_v36, %v430_v3  ;;  %vm458_vm3 = vcmp.lt.f32.partialorder %v1578_v19, 0.0 }
 0x125   :  { %v471_v40 = vsel %vm455_vm14, %v463_v27, %v447_v59  ;;  %v464_v48 = vsub.f32 0.0, %v448_v21  ;;  %v418_v51 = vmul.f32 %v410_v53, %v1694_v31  ;;  %v462_v8 = vsub.f32 0.0, %v446_v55 }
 0x126   :  { %v479_v41 = vmul.f32 %v471_v40, %v471_v40  ;;  %v483_v42 = vpack.c.bf16 %v471_v40, %v467_v24  ;;  %v473_v60 = vsel %vm457_vm15, %v465_v37, %v449_v32 }
 0x127   :  { %v481_v45 = vmul.f32 %v473_v60, %v473_v60  ;;  %v485_v46 = vpack.c.bf16 %v473_v60, %v469_v61  ;;  %v472_v63 = vsel %vm456_vm0, %v464_v48, %v448_v21  ;;  %v426_v17 = vadd.f32 0.99999934, %v418_v51 }
 0x128   :  { %v487_v50 = vpack.c.bf16 %v479_v41, %v475_v39  ;;  %v480_v16 = vmul.f32 %v472_v63, %v472_v63  ;;  %v484_v22 = vpack.c.bf16 %v472_v63, %v468_v20  ;;  %v470_v31 = vsel %vm454_vm2, %v462_v8, %v446_v55 }
 0x129   :  { %v489_v58 = vpack.c.bf16 %v481_v45, %v477_v43  ;;  %v434_v57 = vmul.f32 %v426_v17, %v1687_v13  ;;  %v478_v9 = vmul.f32 %v470_v31, %v470_v31 }
 0x12a   :  { %515 = vmatprep.subr.bf16.mxu0 %v484_v22  ;;  %v488_v56 = vpack.c.bf16 %v480_v16, %v476_v47 }
 0x12b   :  { %516 = vmatpush1.bf16.msra.mxu0 %v483_v42  ;;  %v442_v62 = vsub.f32 1.5707964, %v434_v57 }
 0x12c   :  { %517 = vmatprep.subr.bf16.mxu0 %v488_v56 }
 0x12d   :  { %v450_v7 = vsel %vm274_vm10, %v442_v62, %v434_v57 }
 0x12e   :  { %v466_v5 = vsub.f32 0.0, %v450_v7 }
 0x12f   :  { %518 = vmatpush1.bf16.msra.mxu0 %v487_v50 }
 0x130   :  { %v474_v13 = vsel %vm458_vm3, %v466_v5, %v450_v7 }
 0x131   :  { %v482_v44 = vmul.f32 %v474_v13, %v474_v13  ;;  %v486_v10 = vpack.c.bf16 %v474_v13, %v470_v31 }
 0x132   :  { %1363 = vmatmul.mubr.msk.bf16.vlgmr.msra.gmra.mrb[4].mxu0 %vm511_vm1, %v1385_v18 }
 0x133   :  { %889 = vmatprep.mubr.bf16.mxu0 %v1476_v4  ;;  %558 = vmatprep.subr.bf16.mxu1 %v486_v10  ;;  %v490_v11 = vpack.c.bf16 %v482_v44, %v478_v9 }
 0x134   :  { %559 = vmatpush1.bf16.msra.mxu1 %v485_v46 }
 0x135   :  { %560 = vmatprep.subr.bf16.mxu1 %v490_v11 }
 0x138   :  { %561 = vmatpush1.bf16.msra.mxu1 %v489_v58 }
 0x13b   :  { %1364 = vmatmul.mubr.msk.bf16.vlgmr.msra.gmra.mrb[4].mxu1 %vm511_vm1, %v1385_v18 }
 0x13c   :  { %932 = vmatprep.mubr.bf16.mxu1 %v1476_v4 }
 0x205   :  { %v549_v26 = vpop.f32.mrb[4].mxu0 }
 0x206   :  { %v1773_v19 = vadd.f32 %v549_v26, %v499_v1  ;;  %v551_v12 = vpop.f32.mrb[5].mxu0 }
 0x207   :  { %v1775_v14 = vadd.f32 %v551_v12, %v499_v1  ;;  %v553_v54 = vpop.f32.mrb[6].mxu0 }
 0x208   :  { %v1778_v15 = vand.u32 2147483647, %v1773_v19  ;;  %v1780_v30 = vadd.f32 %v553_v54, %v504_v49  ;;  %v555_v52 = vpop.f32.mrb[7].mxu0  ;;  %vm793_vm12 = vcmp.lt.f32.partialorder %v1773_v19, 0.0 }
 0x209   :  { %v1783_v33 = vand.u32 2147483647, %v1775_v14  ;;  %v1785_v2 = vadd.f32 %v555_v52, %v504_v49  ;;  %vm794_vm13 = vcmp.lt.f32.partialorder %v1775_v14, 0.0 }
 0x20a   :  { %v617_v38 = vmax.f32 %v1778_v15, 1.0  ;;  %v1789_v3 = vand.u32 2147483647, %v1780_v30  ;;  %vm609_vm4 = vcmp.gt.f32.partialorder %v1778_v15, 1.0  ;;  %vm797_vm14 = vcmp.lt.f32.partialorder %v1780_v30, 0.0 }
 0x20b   :  { %v618_v23 = vmax.f32 %v1783_v33, 1.0  ;;  %v1793_v25 = vand.u32 2147483647, %v1785_v2  ;;  %vm610_vm5 = vcmp.gt.f32.partialorder %v1783_v33, 1.0  ;;  %vm798_vm15 = vcmp.lt.f32.partialorder %v1785_v2, 0.0 }
 0x20c   :  { %1403 = vrcp.f32 %v617_v38  ;;  %v621_v6 = vmax.f32 %v1789_v3, 1.0  ;;  %vm613_vm6 = vcmp.gt.f32.partialorder %v1789_v3, 1.0 }
 0x20d   :  { %1405 = vrcp.f32 %v618_v23  ;;  %v622_v28 = vmax.f32 %v1793_v25, 1.0  ;;  %vm614_vm7 = vcmp.gt.f32.partialorder %v1793_v25, 1.0 }
 0x20e   :  { %1407 = vrcp.f32 %v621_v6  ;;  %v592_v24 = vpop.f32.mrb[4].mxu1 }
 0x20f   :  { %1409 = vrcp.f32 %v622_v28  ;;  %v1797_v59 = vadd.f32 %v592_v24, %v499_v1  ;;  %v594_v29 = vpop.f32.mrb[5].mxu1 }
 0x210   :  { %v1799_v27 = vadd.f32 %v594_v29, %v499_v1  ;;  %v596_v32 = vpop.f32.mrb[6].mxu1 }
 0x211   :  { %v1802_v35 = vand.u32 2147483647, %v1797_v59  ;;  %v1804_v61 = vadd.f32 %v596_v32, %v504_v49  ;;  %v598_v36 = vpop.f32.mrb[7].mxu1  ;;  %vm795_vm0 = vcmp.lt.f32.partialorder %v1797_v59, 0.0 }
 0x212   :  { %v1807_v37 = vand.u32 2147483647, %v1799_v27  ;;  %v1809_v34 = vadd.f32 %v598_v36, %v504_v49  ;;  %vm796_vm3 = vcmp.lt.f32.partialorder %v1799_v27, 0.0  ;;  %v842_v27 = vpop.permute.xlu0 %841 }
 0x213   :  { %v619_v20 = vmax.f32 %v1802_v35, 1.0  ;;  %v1813_v40 = vand.u32 2147483647, %v1804_v61  ;;  %vm611_vm8 = vcmp.gt.f32.partialorder %v1802_v35, 1.0  ;;  %vm799_vm2 = vcmp.lt.f32.partialorder %v1804_v61, 0.0 }
 0x214   :  { %v620_v42 = vmax.f32 %v1807_v37, 1.0  ;;  %v1817_v60 = vand.u32 2147483647, %v1809_v34  ;;  %vm612_vm9 = vcmp.gt.f32.partialorder %v1807_v37, 1.0 }
 0x215   :  { %1411 = vrcp.f32 %v619_v20  ;;  %v623_v45 = vmax.f32 %v1813_v40, 1.0  ;;  %vm615_vm10 = vcmp.gt.f32.partialorder %v1813_v40, 1.0 }
 0x216   :  { %v1404_v39 = vpop.eup %1403  ;;  %1413 = vrcp.f32 %v620_v42  ;;  %v624_v16 = vmax.f32 %v1817_v60, 1.0  ;;  %vm616_vm11 = vcmp.gt.f32.partialorder %v1817_v60, 1.0 }
 0x217   :  { %v1406_v21 = vpop.eup %1405  ;;  %v633_v41 = vmul.f32 %v1404_v39, %v617_v38  ;;  %1415 = vrcp.f32 %v623_v45 }
 0x218   :  { %v1408_v48 = vpop.eup %1407  ;;  %v634_v43 = vmul.f32 %v1406_v21, %v618_v23  ;;  %1417 = vrcp.f32 %v624_v16 }
 0x219   :  { %v1410_v46 = vpop.eup %1409  ;;  %v641_v53 = vsub.f32 2.0, %v633_v41  ;;  %v637_v47 = vmul.f32 %v1408_v48, %v621_v6 }
 0x21a   :  { %v642_v63 = vsub.f32 2.0, %v634_v43  ;;  %v638_v50 = vmul.f32 %v1410_v46, %v622_v28 }
 0x21b   :  { %v649_v51 = vmul.f32 %v1404_v39, %v641_v53  ;;  %v645_v22 = vsub.f32 2.0, %v637_v47 }
 0x21c   :  { %v650_v58 = vmul.f32 %v1406_v21, %v642_v63  ;;  %v646_v55 = vsub.f32 2.0, %v638_v50 }
 0x21d   :  { %v1825_v17 = vsel %vm609_vm4, %v649_v51, %v1778_v15  ;;  %v653_v56 = vmul.f32 %v1408_v48, %v645_v22 }
 0x21e   :  { %v1830_v57 = vmul.f32 %v1825_v17, %v1825_v17  ;;  %v1835_v8 = vsel %vm610_vm5, %v650_v58, %v1783_v33  ;;  %v654_v62 = vmul.f32 %v1410_v46, %v646_v55 }
 0x21f   :  { %v1840_v18 = vmul.f32 %v1835_v8, %v1835_v8  ;;  %v1845_v7 = vsel %vm613_vm6, %v653_v56, %v1789_v3  ;;  %v1412_v10 = vpop.eup %1411 }
 0x220   :  { %v673_v31 = vmul.f32 0.007825483, %v1830_v57  ;;  %v1851_v5 = vmul.f32 %v1845_v7, %v1845_v7  ;;  %v1856_v13 = vsel %vm614_vm7, %v654_v62, %v1793_v25  ;;  %v1414_v26 = vpop.eup %1413  ;;  %v635_v12 = vmul.f32 %v1412_v10, %v619_v20 }
 0x221   :  { %v674_v9 = vmul.f32 0.007825483, %v1840_v18  ;;  %v1861_v44 = vmul.f32 %v1856_v13, %v1856_v13  ;;  %v1416_v52 = vpop.eup %1415  ;;  %v636_v23 = vmul.f32 %v1414_v26, %v620_v42 }
 0x222   :  { %v681_v11 = vadd.f32 -0.036898628, %v673_v31  ;;  %v677_v1 = vmul.f32 0.007825483, %v1851_v5  ;;  %v643_v28 = vsub.f32 2.0, %v635_v12  ;;  %v639_v29 = vmul.f32 %v1416_v52, %v623_v45  ;;  %v1418_v36 = vpop.eup %1417 }
 0x223   :  { %v682_v49 = vadd.f32 -0.036898628, %v674_v9  ;;  %v678_v54 = vmul.f32 0.007825483, %v1861_v44  ;;  %v644_v21 = vsub.f32 2.0, %v636_v23  ;;  %v640_v45 = vmul.f32 %v1418_v36, %v624_v16 }
 0x224   :  { %v689_v38 = vmul.f32 %v681_v11, %v1830_v57  ;;  %v685_v6 = vadd.f32 -0.036898628, %v677_v1  ;;  %v651_v41 = vmul.f32 %v1412_v10, %v643_v28  ;;  %v647_v43 = vsub.f32 2.0, %v639_v29 }
 0x225   :  { %v690_v24 = vmul.f32 %v682_v49, %v1840_v18  ;;  %v686_v32 = vadd.f32 -0.036898628, %v678_v54  ;;  %v652_v53 = vmul.f32 %v1414_v26, %v644_v21 }
 0x226   :  { %v697_v39 = vadd.f32 0.08374155, %v689_v38  ;;  %v693_v20 = vmul.f32 %v685_v6, %v1851_v5  ;;  %v1877_v63 = vsel %vm611_vm8, %v651_v41, %v1802_v35  ;;  %v655_v51 = vmul.f32 %v1416_v52, %v647_v43 }
 0x227   :  { %v698_v48 = vadd.f32 0.08374155, %v690_v24  ;;  %v694_v46 = vmul.f32 %v686_v32, %v1861_v44  ;;  %v1882_v55 = vmul.f32 %v1877_v63, %v1877_v63  ;;  %v1887_v56 = vsel %vm612_vm9, %v652_v53, %v1807_v37 }
 0x228   :  { %v705_v42 = vmul.f32 %v697_v39, %v1830_v57  ;;  %v701_v47 = vadd.f32 0.08374155, %v693_v20  ;;  %v1892_v31 = vmul.f32 %v1887_v56, %v1887_v56  ;;  %v1897_v9 = vsel %vm615_vm10, %v655_v51, %v1813_v40 }
 0x229   :  { %v706_v50 = vmul.f32 %v698_v48, %v1840_v18  ;;  %v702_v22 = vadd.f32 0.08374155, %v694_v46  ;;  %v675_v1 = vmul.f32 0.007825483, %v1882_v55  ;;  %v1904_v12 = vmul.f32 %v1897_v9, %v1897_v9 }
 0x22a   :  { %v713_v58 = vadd.f32 -0.13480406, %v705_v42  ;;  %v709_v16 = vmul.f32 %v701_v47, %v1851_v5  ;;  %v676_v54 = vmul.f32 0.007825483, %v1892_v31  ;;  %v648_v38 = vsub.f32 2.0, %v640_v45 }
 0x22b   :  { %v714_v62 = vadd.f32 -0.13480406, %v706_v50  ;;  %v710_v10 = vmul.f32 %v702_v22, %v1861_v44  ;;  %v683_v6 = vadd.f32 -0.036898628, %v675_v1  ;;  %v679_v24 = vmul.f32 0.007825483, %v1904_v12 }
 0x22c   :  { %v721_v11 = vmul.f32 %v713_v58, %v1830_v57  ;;  %v717_v26 = vadd.f32 -0.13480406, %v709_v16  ;;  %v684_v32 = vadd.f32 -0.036898628, %v676_v54  ;;  %v656_v21 = vmul.f32 %v1418_v36, %v648_v38 }
 0x22d   :  { %v722_v49 = vmul.f32 %v714_v62, %v1840_v18  ;;  %v718_v52 = vadd.f32 -0.13480406, %v710_v10  ;;  %v691_v41 = vmul.f32 %v683_v6, %v1882_v55  ;;  %v687_v43 = vadd.f32 -0.036898628, %v679_v24 }
 0x22e   :  { %v729_v23 = vadd.f32 0.19879872, %v721_v11  ;;  %v725_v28 = vmul.f32 %v717_v26, %v1851_v5  ;;  %v692_v42 = vmul.f32 %v684_v32, %v1892_v31  ;;  %v1918_v47 = vsel %vm616_vm11, %v656_v21, %v1817_v60 }
 0x22f   :  { %v730_v29 = vadd.f32 0.19879872, %v722_v49  ;;  %v726_v39 = vmul.f32 %v718_v52, %v1861_v44  ;;  %v699_v50 = vadd.f32 0.08374155, %v691_v41  ;;  %v695_v51 = vmul.f32 %v687_v43, %v1904_v12 }
 0x230   :  { %v737_v20 = vmul.f32 %v729_v23, %v1830_v57  ;;  %v733_v48 = vadd.f32 0.19879872, %v725_v28  ;;  %v700_v58 = vadd.f32 0.08374155, %v692_v42  ;;  %v1925_v62 = vmul.f32 %v1918_v47, %v1918_v47 }
 0x231   :  { %v738_v46 = vmul.f32 %v730_v29, %v1840_v18  ;;  %v734_v53 = vadd.f32 0.19879872, %v726_v39  ;;  %v707_v11 = vmul.f32 %v699_v50, %v1882_v55  ;;  %v703_v26 = vadd.f32 0.08374155, %v695_v51 }
 0x232   :  { %v745_v45 = vadd.f32 -0.33326375, %v737_v20  ;;  %v741_v36 = vmul.f32 %v733_v48, %v1851_v5  ;;  %v708_v54 = vmul.f32 %v700_v58, %v1892_v31  ;;  %v680_v38 = vmul.f32 0.007825483, %v1925_v62 }
 0x233   :  { %v746_v22 = vadd.f32 -0.33326375, %v738_v46  ;;  %v742_v16 = vmul.f32 %v734_v53, %v1861_v44  ;;  %v715_v6 = vadd.f32 -0.13480406, %v707_v11  ;;  %v711_v24 = vmul.f32 %v703_v26, %v1904_v12 }
 0x234   :  { %v753_v10 = vmul.f32 %v745_v45, %v1830_v57  ;;  %v749_v1 = vadd.f32 -0.33326375, %v741_v36  ;;  %v716_v29 = vadd.f32 -0.13480406, %v708_v54 }
 0x235   :  { %v754_v49 = vmul.f32 %v746_v22, %v1840_v18  ;;  %v750_v52 = vadd.f32 -0.33326375, %v742_v16  ;;  %v688_v18 = vadd.f32 -0.036898628, %v680_v38  ;;  %v723_v21 = vmul.f32 %v715_v6, %v1882_v55 }
 0x236   :  { %v761_v23 = vadd.f32 0.99999934, %v753_v10  ;;  %v757_v28 = vmul.f32 %v749_v1, %v1851_v5  ;;  %v719_v41 = vadd.f32 -0.13480406, %v711_v24  ;;  %v724_v5 = vmul.f32 %v716_v29, %v1892_v31 }
 0x237   :  { %v762_v57 = vadd.f32 0.99999934, %v754_v49  ;;  %v758_v32 = vmul.f32 %v750_v52, %v1861_v44  ;;  %v731_v42 = vadd.f32 0.19879872, %v723_v21  ;;  %v696_v36 = vmul.f32 %v688_v18, %v1925_v62 }
 0x238   :  { %v769_v39 = vmul.f32 %v761_v23, %v1825_v17  ;;  %v765_v20 = vadd.f32 0.99999934, %v757_v28  ;;  %v727_v44 = vmul.f32 %v719_v41, %v1904_v12  ;;  %v732_v50 = vadd.f32 0.19879872, %v724_v5 }
 0x239   :  { %v770_v48 = vmul.f32 %v762_v57, %v1835_v8  ;;  %v766_v43 = vadd.f32 0.99999934, %v758_v32  ;;  %v739_v51 = vmul.f32 %v731_v42, %v1882_v55  ;;  %v704_v38 = vadd.f32 0.08374155, %v696_v36 }
 0x23a   :  { %v777_v46 = vsub.f32 1.5707964, %v769_v39  ;;  %v773_v53 = vmul.f32 %v765_v20, %v1845_v7  ;;  %v735_v58 = vadd.f32 0.19879872, %v727_v44  ;;  %v740_v7 = vmul.f32 %v732_v50, %v1892_v31 }
 0x23b   :  { %v778_v45 = vsub.f32 1.5707964, %v770_v48  ;;  %v774_v17 = vmul.f32 %v766_v43, %v1856_v13  ;;  %v747_v1 = vadd.f32 -0.33326375, %v739_v51  ;;  %v712_v14 = vmul.f32 %v704_v38, %v1925_v62 }
 0x23c   :  { %v785_v8 = vsel %vm609_vm4, %v777_v46, %v769_v39  ;;  %v781_v22 = vsub.f32 1.5707964, %v773_v53  ;;  %v743_v49 = vmul.f32 %v735_v58, %v1904_v12  ;;  %v748_v15 = vadd.f32 -0.33326375, %v740_v7 }
 0x23d   :  { %v801_v16 = vsub.f32 0.0, %v785_v8  ;;  %v786_v10 = vsel %vm610_vm5, %v778_v45, %v770_v48  ;;  %v782_v11 = vsub.f32 1.5707964, %v774_v17  ;;  %v755_v23 = vmul.f32 %v747_v1, %v1882_v55 }
 0x23e   :  { %v802_v26 = vsub.f32 0.0, %v786_v10  ;;  %v789_v13 = vsel %vm613_vm6, %v781_v22, %v773_v53  ;;  %v751_v28 = vadd.f32 -0.33326375, %v743_v49  ;;  %v756_v3 = vmul.f32 %v748_v15, %v1892_v31 }
 0x23f   :  { %v805_v54 = vsub.f32 0.0, %v789_v13  ;;  %v790_v52 = vsel %vm614_vm7, %v782_v11, %v774_v17  ;;  %v809_v33 = vsel %vm793_vm12, %v801_v16, %v785_v8  ;;  %v763_v25 = vadd.f32 0.99999934, %v755_v23 }
 0x240   :  { %v810_v6 = vsel %vm794_vm13, %v802_v26, %v786_v10  ;;  %v806_v57 = vsub.f32 0.0, %v790_v52  ;;  %v759_v19 = vmul.f32 %v751_v28, %v1904_v12  ;;  %v817_v18 = vmul.f32 %v809_v33, %v809_v33 }
 0x241   :  { %v813_v24 = vsel %vm797_vm14, %v805_v54, %v789_v13  ;;  %v818_v39 = vmul.f32 %v810_v6, %v810_v6  ;;  %v771_v21 = vmul.f32 %v763_v25, %v1877_v63  ;;  %v764_v30 = vadd.f32 0.99999934, %v756_v3 }
 0x242   :  { %v821_v29 = vmul.f32 %v813_v24, %v813_v24  ;;  %v825_v32 = vpack.c.bf16 %v813_v24, %v809_v33  ;;  %v814_v55 = vsel %vm798_vm15, %v806_v57, %v790_v52  ;;  %v767_v20 = vadd.f32 0.99999934, %v759_v19  ;;  %v1996_v33 = vpop.permute.xlu1 %846 }
 0x243   :  { %v822_v31 = vmul.f32 %v814_v55, %v814_v55  ;;  %v826_v41 = vpack.c.bf16 %v814_v55, %v810_v6  ;;  %v720_v48 = vadd.f32 -0.13480406, %v712_v14  ;;  %v779_v2 = vsub.f32 1.5707964, %v771_v21 }
 0x244   :  { %v829_v5 = vpack.c.bf16 %v821_v29, %v817_v18  ;;  %v775_v43 = vmul.f32 %v767_v20, %v1897_v9  ;;  %v772_v44 = vmul.f32 %v764_v30, %v1887_v56  ;;  %v1386_v9 = vld [vmem:[%s2224_s1 + $0x8] sm:$0xff]   ;;  %vm800_vm4 = vcmp.lt.f32.partialorder %v1809_v34, 0.0 }
 0x245   :  { %857 = vmatprep.subr.bf16.mxu0 %v826_v41  ;;  %v830_v46 = vpack.c.bf16 %v822_v31, %v818_v39  ;;  %v728_v12 = vmul.f32 %v720_v48, %v1925_v62  ;;  %v787_v42 = vsel %vm611_vm8, %v779_v2, %v771_v21 }
 0x246   :  { %858 = vmatpush1.bf16.msra.mxu0 %v825_v32  ;;  %v783_v53 = vsub.f32 1.5707964, %v775_v43  ;;  %v803_v63 = vsub.f32 0.0, %v787_v42  ;;  %v780_v8 = vsub.f32 1.5707964, %v772_v44 }
 0x247   :  { %859 = vmatprep.subr.bf16.mxu0 %v830_v46  ;;  %v736_v45 = vadd.f32 0.19879872, %v728_v12 }
 0x248   :  { %v791_v50 = vsel %vm615_vm10, %v783_v53, %v775_v43  ;;  %v811_v17 = vsel %vm795_vm0, %v803_v63, %v787_v42  ;;  %v788_v10 = vsel %vm612_vm9, %v780_v8, %v772_v44 }
 0x249   :  { %v807_v36 = vsub.f32 0.0, %v791_v50  ;;  %v744_v35 = vmul.f32 %v736_v45, %v1925_v62  ;;  %v819_v22 = vmul.f32 %v811_v17, %v811_v17  ;;  %v804_v61 = vsub.f32 0.0, %v788_v10 }
 0x24a   :  { %860 = vmatpush1.bf16.msra.mxu0 %v829_v5 }
 0x24b   :  { %v815_v51 = vsel %vm799_vm2, %v807_v36, %v791_v50  ;;  %v752_v56 = vadd.f32 -0.33326375, %v744_v35  ;;  %v812_v13 = vsel %vm796_vm3, %v804_v61, %v788_v10 }
 0x24c   :  { %v823_v58 = vmul.f32 %v815_v51, %v815_v51  ;;  %v827_v59 = vpack.c.bf16 %v815_v51, %v811_v17  ;;  %v820_v15 = vmul.f32 %v812_v13, %v812_v13 }
 0x24d   :  { %1370 = vmatmul.mubr.msk.bf16.vlgmr.msra.gmra.mrb[8].mxu0 %vm511_vm1, %v1386_v9  ;;  %v760_v40 = vmul.f32 %v752_v56, %v1925_v62 }
 0x24e   :  { %1211 = vmatprep.mubr.bf16.mxu0 %v1476_v4  ;;  %v831_v16 = vpack.c.bf16 %v823_v58, %v819_v22 }
 0x24f   :  { %v768_v7 = vadd.f32 0.99999934, %v760_v40 }
 0x251   :  { %v776_v11 = vmul.f32 %v768_v7, %v1918_v47 }
 0x253   :  { %v784_v1 = vsub.f32 1.5707964, %v776_v11 }
 0x255   :  { %v792_v26 = vsel %vm616_vm11, %v784_v1, %v776_v11 }
 0x256   :  { %v808_v49 = vsub.f32 0.0, %v792_v26 }
 0x258   :  { %v816_v62 = vsel %vm800_vm4, %v808_v49, %v792_v26 }
 0x259   :  { %v824_v54 = vmul.f32 %v816_v62, %v816_v62  ;;  %v828_v52 = vpack.c.bf16 %v816_v62, %v812_v13 }
 0x25b   :  { %900 = vmatprep.subr.bf16.mxu1 %v828_v52  ;;  %v832_v37 = vpack.c.bf16 %v824_v54, %v820_v15 }
 0x25c   :  { %901 = vmatpush1.bf16.msra.mxu1 %v827_v59 }
 0x25d   :  { %902 = vmatprep.subr.bf16.mxu1 %v832_v37 }
 0x260   :  { %903 = vmatpush1.bf16.msra.mxu1 %v831_v16 }
 0x263   :  { %1371 = vmatmul.mubr.msk.bf16.vlgmr.msra.gmra.mrb[8].mxu1 %vm511_vm1, %v1386_v9 }
 0x264   :  { %1252 = vmatprep.mubr.bf16.mxu1 %v1476_v4 }
 0x320   :  { %v891_v60 = vpop.f32.mrb[8].mxu0 }
 0x321   :  { %v1994_v47 = vadd.f32 %v891_v60, %v842_v27  ;;  %v893_v38 = vpop.f32.mrb[9].mxu0 }
 0x322   :  { %v1998_v34 = vadd.f32 %v893_v38, %v842_v27  ;;  %v895_v23 = vpop.f32.mrb[10].mxu0 }
 0x323   :  { %v2001_v6 = vand.u32 2147483647, %v1994_v47  ;;  %v2004_v28 = vadd.f32 %v895_v23, %v1996_v33  ;;  %v897_v3 = vpop.f32.mrb[11].mxu0  ;;  %vm1135_vm12 = vcmp.lt.f32.partialorder %v1994_v47, 0.0 }
 0x324   :  { %v2007_v24 = vand.u32 2147483647, %v1998_v34  ;;  %v2010_v4 = vadd.f32 %v897_v3, %v1996_v33  ;;  %vm1136_vm13 = vcmp.lt.f32.partialorder %v1998_v34, 0.0 }
 0x325   :  { %v959_v57 = vmax.f32 %v2001_v6, 1.0  ;;  %v2014_v25 = vand.u32 2147483647, %v2004_v28  ;;  %vm951_vm5 = vcmp.gt.f32.partialorder %v2001_v6, 1.0  ;;  %vm1139_vm14 = vcmp.lt.f32.partialorder %v2004_v28, 0.0 }
 0x326   :  { %v960_v29 = vmax.f32 %v2007_v24, 1.0  ;;  %v2018_v32 = vand.u32 2147483647, %v2010_v4  ;;  %vm952_vm6 = vcmp.gt.f32.partialorder %v2007_v24, 1.0  ;;  %vm1140_vm0 = vcmp.lt.f32.partialorder %v2010_v4, 0.0 }
 0x327   :  { %1419 = vrcp.f32 %v959_v57  ;;  %v963_v19 = vmax.f32 %v2014_v25, 1.0  ;;  %vm955_vm7 = vcmp.gt.f32.partialorder %v2014_v25, 1.0 }
 0x328   :  { %1421 = vrcp.f32 %v960_v29  ;;  %v964_v18 = vmax.f32 %v2018_v32, 1.0  ;;  %vm956_vm8 = vcmp.gt.f32.partialorder %v2018_v32, 1.0 }
 0x329   :  { %1423 = vrcp.f32 %v963_v19 }
 0x32a   :  { %1425 = vrcp.f32 %v964_v18 }
 0x331   :  { %v1420_v39 = vpop.eup %1419 }
 0x332   :  { %v1422_v55 = vpop.eup %1421  ;;  %v975_v14 = vmul.f32 %v1420_v39, %v959_v57 }
 0x333   :  { %v1424_v21 = vpop.eup %1423  ;;  %v976_v20 = vmul.f32 %v1422_v55, %v960_v29 }
 0x334   :  { %v1426_v31 = vpop.eup %1425  ;;  %v983_v41 = vsub.f32 2.0, %v975_v14  ;;  %v979_v30 = vmul.f32 %v1424_v21, %v963_v19 }
 0x335   :  { %v984_v48 = vsub.f32 2.0, %v976_v20  ;;  %v980_v5 = vmul.f32 %v1426_v31, %v964_v18 }
 0x336   :  { %v991_v2 = vmul.f32 %v1420_v39, %v983_v41  ;;  %v987_v43 = vsub.f32 2.0, %v979_v30  ;;  %v934_v46 = vpop.f32.mrb[8].mxu1 }
 0x337   :  { %v992_v12 = vmul.f32 %v1422_v55, %v984_v48  ;;  %v988_v42 = vsub.f32 2.0, %v980_v5  ;;  %v2028_v63 = vadd.f32 %v934_v46, %v842_v27  ;;  %v936_v44 = vpop.f32.mrb[9].mxu1 }
 0x338   :  { %v2026_v53 = vsel %vm951_vm5, %v991_v2, %v2001_v6  ;;  %v995_v45 = vmul.f32 %v1424_v21, %v987_v43  ;;  %v2040_v17 = vadd.f32 %v936_v44, %v842_v27  ;;  %v938_v36 = vpop.f32.mrb[10].mxu1 }
 0x339   :  { %v2033_v50 = vmul.f32 %v2026_v53, %v2026_v53  ;;  %v2038_v9 = vsel %vm952_vm6, %v992_v12, %v2007_v24  ;;  %v2044_v35 = vand.u32 2147483647, %v2028_v63  ;;  %v940_v56 = vpop.f32.mrb[11].mxu1  ;;  %v996_v40 = vmul.f32 %v1426_v31, %v988_v42 }
 0x33a   :  { %v2048_v8 = vmul.f32 %v2038_v9, %v2038_v9  ;;  %v2053_v51 = vsel %vm955_vm7, %v995_v45, %v2014_v25  ;;  %v2057_v58 = vand.u32 2147483647, %v2040_v17  ;;  %v2066_v7 = vadd.f32 %v938_v36, %v1996_v33 }
 0x33b   :  { %v1015_v22 = vmul.f32 0.007825483, %v2033_v50  ;;  %v2061_v59 = vmul.f32 %v2053_v51, %v2053_v51  ;;  %v961_v16 = vmax.f32 %v2044_v35, 1.0  ;;  %v2078_v15 = vsel %vm956_vm8, %v996_v40, %v2018_v32 }
 0x33c   :  { %v1016_v10 = vmul.f32 0.007825483, %v2048_v8  ;;  %v962_v61 = vmax.f32 %v2057_v58, 1.0  ;;  %v2071_v13 = vand.u32 2147483647, %v2066_v7  ;;  %v2084_v37 = vmul.f32 %v2078_v15, %v2078_v15 }
 0x33d   :  { %v1023_v11 = vadd.f32 -0.036898628, %v1015_v22  ;;  %v1019_v1 = vmul.f32 0.007825483, %v2061_v59  ;;  %1427 = vrcp.f32 %v961_v16  ;;  %v2088_v38 = vadd.f32 %v940_v56, %v1996_v33 }
 0x33e   :  { %v1024_v26 = vadd.f32 -0.036898628, %v1016_v10  ;;  %1429 = vrcp.f32 %v962_v61  ;;  %v965_v52 = vmax.f32 %v2071_v13, 1.0  ;;  %v1020_v3 = vmul.f32 0.007825483, %v2084_v37 }
 0x33f   :  { %v1031_v49 = vmul.f32 %v1023_v11, %v2033_v50  ;;  %v1027_v62 = vadd.f32 -0.036898628, %v1019_v1  ;;  %v2093_v19 = vand.u32 2147483647, %v2088_v38  ;;  %vm953_vm9 = vcmp.gt.f32.partialorder %v2044_v35, 1.0 }
 0x340   :  { %v1032_v54 = vmul.f32 %v1024_v26, %v2048_v8  ;;  %1431 = vrcp.f32 %v965_v52  ;;  %v1028_v39 = vadd.f32 -0.036898628, %v1020_v3  ;;  %vm954_vm10 = vcmp.gt.f32.partialorder %v2057_v58, 1.0 }
 0x341   :  { %v1039_v27 = vadd.f32 0.08374155, %v1031_v49  ;;  %v1035_v60 = vmul.f32 %v1027_v62, %v2061_v59  ;;  %v966_v21 = vmax.f32 %v2093_v19, 1.0  ;;  %vm957_vm11 = vcmp.gt.f32.partialorder %v2071_v13, 1.0 }
 0x342   :  { %v1040_v23 = vadd.f32 0.08374155, %v1032_v54  ;;  %v1036_v20 = vmul.f32 %v1028_v39, %v2084_v37  ;;  %vm958_vm15 = vcmp.gt.f32.partialorder %v2093_v19, 1.0  ;;  %vm1137_vm2 = vcmp.lt.f32.partialorder %v2028_v63, 0.0 }
 0x343   :  { %v1047_v57 = vmul.f32 %v1039_v27, %v2033_v50  ;;  %v1043_v29 = vadd.f32 0.08374155, %v1035_v60  ;;  %1433 = vrcp.f32 %v966_v21  ;;  %vm1141_vm3 = vcmp.lt.f32.partialorder %v2066_v7, 0.0 }
 0x344   :  { %v1048_v18 = vmul.f32 %v1040_v23, %v2048_v8  ;;  %v1044_v5 = vadd.f32 0.08374155, %v1036_v20  ;;  %vm1138_vm4 = vcmp.lt.f32.partialorder %v2040_v17, 0.0 }
 0x345   :  { %v1055_v55 = vadd.f32 -0.13480406, %v1047_v57  ;;  %v1051_v14 = vmul.f32 %v1043_v29, %v2061_v59 }
 0x346   :  { %v1056_v33 = vadd.f32 -0.13480406, %v1048_v18  ;;  %v1052_v45 = vmul.f32 %v1044_v5, %v2084_v37 }
 0x347   :  { %v1063_v31 = vmul.f32 %v1055_v55, %v2033_v50  ;;  %v1059_v41 = vadd.f32 -0.13480406, %v1051_v14  ;;  %v1428_v30 = vpop.eup %1427 }
 0x348   :  { %v1064_v48 = vmul.f32 %v1056_v33, %v2048_v8  ;;  %v1430_v2 = vpop.eup %1429  ;;  %v977_v46 = vmul.f32 %v1428_v30, %v961_v16  ;;  %v1060_v1 = vadd.f32 -0.13480406, %v1052_v45 }
 0x349   :  { %v1071_v43 = vadd.f32 0.19879872, %v1063_v31  ;;  %v1067_v12 = vmul.f32 %v1059_v41, %v2061_v59  ;;  %v978_v44 = vmul.f32 %v1430_v2, %v962_v61 }
 0x34a   :  { %v1072_v42 = vadd.f32 0.19879872, %v1064_v48  ;;  %v985_v56 = vsub.f32 2.0, %v977_v46  ;;  %v1432_v40 = vpop.eup %1431  ;;  %v1068_v27 = vmul.f32 %v1060_v1, %v2084_v37 }
 0x34b   :  { %v1079_v36 = vmul.f32 %v1071_v43, %v2033_v50  ;;  %v1075_v22 = vadd.f32 0.19879872, %v1067_v12  ;;  %v986_v11 = vsub.f32 2.0, %v978_v44  ;;  %v981_v61 = vmul.f32 %v1432_v40, %v965_v52 }
 0x34c   :  { %v1080_v10 = vmul.f32 %v1072_v42, %v2048_v8  ;;  %v993_v26 = vmul.f32 %v1428_v30, %v985_v56  ;;  %v1076_v39 = vadd.f32 0.19879872, %v1068_v27 }
 0x34d   :  { %v1087_v16 = vadd.f32 -0.33326375, %v1079_v36  ;;  %v1083_v49 = vmul.f32 %v1075_v22, %v2061_v59  ;;  %v994_v54 = vmul.f32 %v1430_v2, %v986_v11  ;;  %v989_v57 = vsub.f32 2.0, %v981_v61 }
 0x34e   :  { %v1088_v62 = vadd.f32 -0.33326375, %v1080_v10  ;;  %v2114_v23 = vsel %vm953_vm9, %v993_v26, %v2044_v35  ;;  %v1084_v41 = vmul.f32 %v1076_v39, %v2084_v37 }
 0x34f   :  { %v1095_v60 = vmul.f32 %v1087_v16, %v2033_v50  ;;  %v1091_v3 = vadd.f32 -0.33326375, %v1083_v49  ;;  %v2118_v29 = vmul.f32 %v2114_v23, %v2114_v23  ;;  %v2124_v18 = vsel %vm954_vm10, %v994_v54, %v2057_v58  ;;  %v1434_v50 = vpop.eup %1433 }
 0x350   :  { %v1096_v52 = vmul.f32 %v1088_v62, %v2048_v8  ;;  %v2129_v14 = vmul.f32 %v2124_v18, %v2124_v18  ;;  %v997_v20 = vmul.f32 %v1432_v40, %v989_v57  ;;  %v982_v30 = vmul.f32 %v1434_v50, %v966_v21 }
 0x351   :  { %v1103_v55 = vadd.f32 0.99999934, %v1095_v60  ;;  %v1099_v33 = vmul.f32 %v1091_v3, %v2061_v59  ;;  %v1017_v31 = vmul.f32 0.007825483, %v2118_v29  ;;  %v1092_v42 = vadd.f32 -0.33326375, %v1084_v41 }
 0x352   :  { %v1104_v8 = vadd.f32 0.99999934, %v1096_v52  ;;  %v1018_v5 = vmul.f32 0.007825483, %v2129_v14  ;;  %v2139_v43 = vsel %vm957_vm11, %v997_v20, %v2071_v13  ;;  %v990_v45 = vsub.f32 2.0, %v982_v30 }
 0x353   :  { %v1111_v48 = vmul.f32 %v1103_v55, %v2026_v53  ;;  %v1107_v2 = vadd.f32 0.99999934, %v1099_v33  ;;  %v1025_v46 = vadd.f32 -0.036898628, %v1017_v31  ;;  %v2144_v12 = vmul.f32 %v2139_v43, %v2139_v43 }
 0x354   :  { %v1112_v59 = vmul.f32 %v1104_v8, %v2038_v9  ;;  %v1026_v53 = vadd.f32 -0.036898628, %v1018_v5  ;;  %v1100_v40 = vmul.f32 %v1092_v42, %v2084_v37  ;;  %v998_v1 = vmul.f32 %v1434_v50, %v990_v45 }
 0x355   :  { %v1119_v44 = vsub.f32 1.5707964, %v1111_v48  ;;  %v1115_v21 = vmul.f32 %v1107_v2, %v2053_v51  ;;  %v1033_v36 = vmul.f32 %v1025_v46, %v2118_v29  ;;  %v1021_v22 = vmul.f32 0.007825483, %v2144_v12 }
 0x356   :  { %v1120_v56 = vsub.f32 1.5707964, %v1112_v59  ;;  %v1034_v10 = vmul.f32 %v1026_v53, %v2129_v14  ;;  %v1108_v27 = vadd.f32 0.99999934, %v1100_v40  ;;  %v2173_v28 = vsel %vm958_vm15, %v998_v1, %v2093_v19 }
 0x357   :  { %v1127_v9 = vsel %vm951_vm5, %v1119_v44, %v1111_v48  ;;  %v1123_v11 = vsub.f32 1.5707964, %v1115_v21  ;;  %v1041_v26 = vadd.f32 0.08374155, %v1033_v36  ;;  %v1029_v49 = vadd.f32 -0.036898628, %v1021_v22 }
 0x358   :  { %v1143_v16 = vsub.f32 0.0, %v1127_v9  ;;  %v1128_v51 = vsel %vm952_vm6, %v1120_v56, %v1112_v59  ;;  %v1042_v62 = vadd.f32 0.08374155, %v1034_v10  ;;  %v1116_v24 = vmul.f32 %v1108_v27, %v2078_v15 }
 0x359   :  { %v1144_v61 = vsub.f32 0.0, %v1128_v51  ;;  %v1131_v54 = vsel %vm955_vm7, %v1123_v11, %v1115_v21  ;;  %v1049_v37 = vmul.f32 %v1041_v26, %v2118_v29  ;;  %v1037_v3 = vmul.f32 %v1029_v49, %v2144_v12 }
 0x35a   :  { %v1151_v6 = vsel %vm1135_vm12, %v1143_v16, %v1127_v9  ;;  %v1147_v60 = vsub.f32 0.0, %v1131_v54  ;;  %v1050_v57 = vmul.f32 %v1042_v62, %v2129_v14  ;;  %v1124_v20 = vsub.f32 1.5707964, %v1116_v24 }
 0x35b   :  { %v1159_v52 = vmul.f32 %v1151_v6, %v1151_v6  ;;  %v1057_v25 = vadd.f32 -0.13480406, %v1049_v37  ;;  %v1045_v50 = vadd.f32 0.08374155, %v1037_v3  ;;  %v1152_v8 = vsel %vm1136_vm13, %v1144_v61, %v1128_v51 }
 0x35c   :  { %v1155_v39 = vsel %vm1139_vm14, %v1147_v60, %v1131_v54  ;;  %v1058_v55 = vadd.f32 -0.13480406, %v1050_v57  ;;  %v1132_v30 = vsel %vm956_vm8, %v1124_v20, %v1116_v24  ;;  %v1014_v48 = vmul.f32 %v2173_v28, %v2173_v28 }
 0x35d   :  { %v1163_v47 = vmul.f32 %v1155_v39, %v1155_v39  ;;  %v1167_v33 = vpack.c.bf16 %v1155_v39, %v1151_v6  ;;  %v1065_v31 = vmul.f32 %v1057_v25, %v2118_v29  ;;  %v1053_v41 = vmul.f32 %v1045_v50, %v2144_v12  ;;  %v1175_v6 = vld [vmem:[%s2225_s2] sm:$0xf]  ;;  %s1478_s2 = smov [#allocation2]  }
 0x35e   :  { %v1066_v15 = vmul.f32 %v1058_v55, %v2129_v14  ;;  %v1148_v34 = vsub.f32 0.0, %v1132_v30  ;;  %v1022_v42 = vmul.f32 0.007825483, %v1014_v48  ;;  %v1160_v53 = vmul.f32 %v1152_v8, %v1152_v8  ;;  %s1336_s10 = sshll.u32 %s1478_s2, 4  ;;  %s1337_s10 = int_to_ptr.vmem [resolvable:$true] %s1336_s10 }
 0x35f   :  { %v1171_v5 = vpack.c.bf16 %v1163_v47, %v1159_v52  ;;  %v1073_v2 = vadd.f32 0.19879872, %v1065_v31  ;;  %v1061_v46 = vadd.f32 -0.13480406, %v1053_v41  ;;  %vm1142_vm5 = vcmp.lt.f32.partialorder %v2088_v38, 0.0  ;;  %s1451_s11 = scalar_lea.vmem %s1337_s10, 64  ;;  %p1456_p1 = scmp.lt.s32.totalorder %s1337_s10, %s1337_s10 }
 0x360   :  { %v1074_v59 = vadd.f32 0.19879872, %v1066_v15  ;;  %v1156_v45 = vsel %vm1140_vm0, %v1148_v34, %v1132_v30  ;;  %v1030_v56 = vadd.f32 -0.036898628, %v1022_v42  ;;  %p1452_p0 = scmp.ne.s32.totalorder %s1337_s10, %s1451_s11  ;;  %p1457_p2 = scmp.lt.s32.totalorder %s1451_s11, %s1451_s11 }
 0x361   :  { %v1081_v44 = vmul.f32 %v1073_v2, %v2118_v29  ;;  %v1069_v21 = vmul.f32 %v1061_v46, %v2144_v12  ;;  %v1164_v36 = vmul.f32 %v1156_v45, %v1156_v45  ;;  %v1168_v22 = vpack.c.bf16 %v1156_v45, %v1152_v8 }
 0x362   :  { %v1082_v32 = vmul.f32 %v1074_v59, %v2129_v14  ;;  %v1038_v11 = vmul.f32 %v1030_v56, %v1014_v48  ;;  %p1458_p3 = por %p1457_p2, %p1456_p1 }
 0x363   :  { %v1089_v40 = vadd.f32 -0.33326375, %v1081_v44  ;;  %v1077_v9 = vadd.f32 0.19879872, %v1069_v21  ;;  %1179 = vmatprep.subr.bf16.mxu0 %v1168_v22  ;;  %v1172_v1 = vpack.c.bf16 %v1164_v36, %v1160_v53 }
 0x364   :  { %v1090_v10 = vadd.f32 -0.33326375, %v1082_v32  ;;  %1180 = vmatpush1.bf16.msra.mxu0 %v1167_v33  ;;  %v1046_v51 = vadd.f32 0.08374155, %v1038_v11  ;;  %p1459_p4 = pnand %p1458_p3, %p1452_p0 }
 0x365   :  { %v1097_v4 = vmul.f32 %v1089_v40, %v2118_v29  ;;  %v1085_v16 = vmul.f32 %v1077_v9, %v2144_v12  ;;  %1181 = vmatprep.subr.bf16.mxu0 %v1172_v1 }
 0x366   :  { %v1098_v26 = vmul.f32 %v1090_v10, %v2129_v14  ;;  %v1054_v62 = vmul.f32 %v1046_v51, %v1014_v48 }
 0x367   :  { %v1105_v49 = vadd.f32 0.99999934, %v1097_v4  ;;  %v1093_v61 = vadd.f32 -0.33326375, %v1085_v16 }
 0x368   :  { %1182 = vmatpush1.bf16.msra.mxu0 %v1171_v5  ;;  %v1106_v29 = vadd.f32 0.99999934, %v1098_v26  ;;  %v1062_v37 = vadd.f32 -0.13480406, %v1054_v62 }
 0x369   :  { %v1113_v54 = vmul.f32 %v1105_v49, %v2114_v23  ;;  %v1101_v27 = vmul.f32 %v1093_v61, %v2144_v12 }
 0x36a   :  { %v1070_v57 = vmul.f32 %v1062_v37, %v1014_v48  ;;  %v1114_v12 = vmul.f32 %v1106_v29, %v2124_v18  ;;  %v1477_v37 = vmov 1966171168  }
 0x36b   :  { %v1121_v60 = vsub.f32 1.5707964, %v1113_v54  ;;  %v1109_v3 = vadd.f32 0.99999934, %v1101_v27  ;;  %1372 = vmatmul.mubr.msk.bf16.vlgmr.msra.gmra.mrb[12].mxu0 %vm511_vm1, %v1175_v6 }
 0x36c   :  { %v1078_v52 = vadd.f32 0.19879872, %v1070_v57  ;;  %v1122_v47 = vsub.f32 1.5707964, %v1114_v12  ;;  %v1306_v57 = vshrl.u32 %v19_v0, 7 }
 0x36d   :  { %v1129_v14 = vsel %vm953_vm9, %v1121_v60, %v1113_v54  ;;  %v1117_v24 = vmul.f32 %v1109_v3, %v2139_v43  ;;  %v1303_v60 = vunpack.c.l.s4 %v1477_v37 }
 0x36e   :  { %v1145_v23 = vsub.f32 0.0, %v1129_v14  ;;  %v1086_v39 = vmul.f32 %v1078_v52, %v1014_v48  ;;  %v1130_v18 = vsel %vm954_vm10, %v1122_v47, %v1114_v12 }
 0x36f   :  { %v1125_v25 = vsub.f32 1.5707964, %v1117_v24  ;;  %v1146_v13 = vsub.f32 0.0, %v1130_v18  ;;  %v1304_v3 = vunpack.c.0.s8 %v1303_v60 }
 0x370   :  { %v1153_v55 = vsel %vm1137_vm2, %v1145_v23, %v1129_v14  ;;  %v1094_v20 = vadd.f32 -0.33326375, %v1086_v39 }
 0x371   :  { %v1133_v50 = vsel %vm957_vm11, %v1125_v25, %v1117_v24  ;;  %v1161_v43 = vmul.f32 %v1153_v55, %v1153_v55  ;;  %v1154_v7 = vsel %vm1138_vm4, %v1146_v13, %v1130_v18  ;;  %v1307_v14 = vsub.s32 %v1304_v3, %v1306_v57 }
 0x372   :  { %v1149_v33 = vsub.f32 0.0, %v1133_v50  ;;  %v1102_v31 = vmul.f32 %v1094_v20, %v1014_v48  ;;  %v1162_v34 = vmul.f32 %v1154_v7, %v1154_v7 }
 0x374   :  { %v1157_v35 = vsel %vm1141_vm3, %v1149_v33, %v1133_v50  ;;  %v1110_v15 = vadd.f32 0.99999934, %v1102_v31 }
 0x375   :  { %v1165_v8 = vmul.f32 %v1157_v35, %v1157_v35  ;;  %v1169_v41 = vpack.c.bf16 %v1157_v35, %v1153_v55 }
 0x376   :  { %v1118_v63 = vmul.f32 %v1110_v15, %v2173_v28  ;;  %v1266_v28 = vpop.permute.xlu0 %1265 }
 0x377   :  { %v1173_v30 = vpack.c.bf16 %v1165_v8, %v1161_v43 }
 0x378   :  { %v1126_v5 = vsub.f32 1.5707964, %v1118_v63 }
 0x37a   :  { %v1134_v2 = vsel %vm958_vm15, %v1126_v5, %v1118_v63 }
 0x37b   :  { %v1150_v46 = vsub.f32 0.0, %v1134_v2 }
 0x37d   :  { %v1158_v48 = vsel %vm1142_vm5, %v1150_v46, %v1134_v2 }
 0x37e   :  { %v1166_v59 = vmul.f32 %v1158_v48, %v1158_v48  ;;  %v1170_v58 = vpack.c.bf16 %v1158_v48, %v1154_v7 }
 0x380   :  { %1220 = vmatprep.subr.bf16.mxu1 %v1170_v58  ;;  %v1174_v42 = vpack.c.bf16 %v1166_v59, %v1162_v34 }
 0x381   :  { %1221 = vmatpush1.bf16.msra.mxu1 %v1169_v41 }
 0x382   :  { %1222 = vmatprep.subr.bf16.mxu1 %v1174_v42 }
 0x385   :  { %1223 = vmatpush1.bf16.msra.mxu1 %v1173_v30 }
 0x388   :  { %1373 = vmatmul.mubr.msk.bf16.vlgmr.msra.gmra.mrb[12].mxu1 %vm511_vm1, %v1175_v6  ;;  %vm1327_vm1 = vcmp.lt.s32.totalorder %v19_v0, 512 }
 0x43e   :  { %v1213_v17 = vpop.f32.mrb[12].mxu0 }
 0x43f   :  { %v1268_v44 = vadd.f32 %v1266_v28, %v1213_v17  ;;  %v1215_v19 = vpop.f32.mrb[13].mxu0 }
 0x440   :  { %v1269_v53 = vadd.f32 %v1266_v28, %v1215_v19  ;;  %v1217_v21 = vpop.f32.mrb[14].mxu0 }
 0x441   :  { %v1375_v45 = vmul.f32 -1.442695, %v1268_v44  ;;  %v1218_v32 = vpop.f32.mrb[15].mxu0 }
 0x442   :  { %v1376_v38 = vmul.f32 -1.442695, %v1269_v53 }
 0x443   :  { %1435 = vpow2.f32 %v1375_v45 }
 0x444   :  { %1437 = vpow2.f32 %v1376_v38 }
 0x44d   :  { %v1436_v36 = vpop.eup %1435 }
 0x44e   :  { %v1438_v56 = vpop.eup %1437  ;;  %v1284_v22 = vadd.f32 1.0, %v1436_v36 }
 0x44f   :  { %v1285_v40 = vadd.f32 1.0, %v1438_v56 }
 0x450   :  { %1439 = vrcp.f32 %v1284_v22 }
 0x451   :  { %1441 = vrcp.f32 %v1285_v40 }
 0x45a   :  { %v1440_v9 = vpop.eup %1439 }
 0x45b   :  { %v1442_v10 = vpop.eup %1441  ;;  %v1254_v11 = vpop.f32.mrb[12].mxu1 }
 0x45c   :  { %v1300_v1 = vcombine.low %v1440_v9, %v1442_v10  ;;  %v1270_v4 = vadd.f32 %v1266_v28, %v1254_v11  ;;  %v1256_v16 = vpop.f32.mrb[13].mxu1 }
 0x45d   :  { %v1271_v26 = vadd.f32 %v1266_v28, %v1256_v16  ;;  %v1258_v51 = vpop.f32.mrb[14].mxu1 }
 0x45e   :  { %v1377_v49 = vmul.f32 -1.442695, %v1270_v4  ;;  %v1259_v61 = vpop.f32.mrb[15].mxu1  ;;  %v1308_v52 = vrot.slane %v1300_v1, %v1307_v14 }
 0x45f   :  { %v1378_v62 = vmul.f32 -1.442695, %v1271_v26 }
 0x460   :  { %1443 = vpow2.f32 %v1377_v49 }
 0x461   :  { %1445 = vpow2.f32 %v1378_v62 }
 0x46a   :  { %v1444_v54 = vpop.eup %1443 }
 0x46b   :  { %v1446_v27 = vpop.eup %1445  ;;  %v1286_v6 = vadd.f32 1.0, %v1444_v54 }
 0x46c   :  { %v1287_v29 = vadd.f32 1.0, %v1446_v27 }
 0x46d   :  { %1447 = vrcp.f32 %v1286_v6 }
 0x46e   :  { %1449 = vrcp.f32 %v1287_v29 }
 0x477   :  { %v1448_v24 = vpop.eup %1447 }
 0x478   :  { %v1450_v23 = vpop.eup %1449 }
 0x479   :  { %v1301_v12 = vcombine.low %v1448_v24, %v1450_v23 }
 0x47b   :  { %v1315_v25 = vrot.slane %v1301_v12, %v1307_v14 }
 0x47d   :  { %v1316_v39 = vcombine.low %v1308_v52, %v1315_v25 }
 0x47f   :  { %v1323_v50 = vrot.slane %v1316_v39, %v1307_v14 }
 0x481   :  { %1329 = vst.msk [vmem:[#allocation2] sm:$0xf] %vm1327_vm1, %v1323_v50 }
 0x482   :  { %1462 = shalt.err (!%p1459_p4)
}
 0x483   :  { %s1463_s14 = scalar_lea.hbm %s2227_s4, 64 }
 0x484   :  { %p1464_p5 = scmp.ne.s32.totalorder %s2227_s4, %s1463_s14  ;;  %p1467_p6 = scmp.lt.u32.totalorder %s1463_s14, %s2227_s4 }
 0x486   :  { %p1469_p7 = pnand %p1467_p6, %p1464_p5 }
 0x488   :  { %1472 = shalt.err (!%p1469_p7)
}
 0x489   :  { %1339 = dma.vmem_to_hbm [thread:$0]  %s1337_s10, 64, %s2227_s4, [#allocation3]  }
 0x48a   :  { %1473 = dma.done.wait [#allocation3], 64  }
 0x48b   :  { %1474 = vsyncadd [#allocation3], 4294967232 }
 0x48c   :  { %1343 = vsyncpa [#allocation3], 1 }

</bundles_post_ra>
